<compile_context>
chip_gen: v7x
topology: tpu7x:2x2x1
jax: 0.10.0
libtpu: 0.0.40
codegen_flags: <defaults>
</compile_context>

<pallas_src>
import jax
import jax.numpy as jnp
from jax.experimental import pallas as pl
from jax.experimental.pallas import tpu as pltpu


# ---------------------------------------------------------------------------
# Kernel A: additive attention + single-step GRU.  Tiny (B rows), runs once,
# ungridded, all f32.  Also emits the bf16 concatenated fcout activation
# [x | ctx | h] so the streaming kernel does one dot per weight tile.
# ---------------------------------------------------------------------------
def _attn_gru_kernel(
    enc_ref,    # (B, S, Ep)   f32  encoder outputs, lanes E..Ep zero-padded
    hid_ref,    # (B, Hp)      f32  previous decoder hidden, zero-padded
    x_ref,      # (B, Pp)      f32  flattened input image, zero-padded
    wah_ref,    # (Hp, Ap)     f32  attention, hidden slice
    wae_ref,    # (Ep, Ap)     f32  attention, encoder slice
    ba_ref,     # (1, Ap)      f32
    va_ref,     # (1, Ap)      f32
    wih_x_ref,  # (Pp, 3*Hp)   f32  GRU input->hidden, image slice
    wih_c_ref,  # (Ep, 3*Hp)   f32  GRU input->hidden, context slice
    whh_ref,    # (Hp, 3*Hp)   f32
    bih_ref,    # (1, 3*Hp)    f32
    bhh_ref,    # (1, 3*Hp)    f32
    fcin_ref,   # out (B, Pp+Ep+Hp) bf16   concatenated [x | ctx | h]
    hout_ref,   # out (B, Hp)  f32
):
    enc = enc_ref[...]
    hid = hid_ref[...]
    x = x_ref[...]
    B, S, Ep = enc.shape
    Hp = hid.shape[1]
    Pp = x.shape[1]
    A = wah_ref.shape[1]
    f32 = jnp.float32

    # Additive (Bahdanau) attention: v . tanh(W_h h + W_e enc + b), softmax over S.
    # (S is a multiple of 8 so the (B,S,Ep)->(B*S,Ep) reshape is a free view.)
    e_lin = jnp.dot(enc.reshape(B * S, Ep), wae_ref[...],
                    preferred_element_type=f32).reshape(B, S, A)
    h_lin = jnp.dot(hid, wah_ref[...], preferred_element_type=f32)
    energy = jnp.tanh(e_lin + h_lin[:, None, :] + ba_ref[...][None, :, :])
    scores = jnp.sum(energy * va_ref[...][None, :, :], axis=-1)           # (B, S)
    m = jnp.max(scores, axis=1, keepdims=True)
    ex = jnp.exp(scores - m)
    attn = ex * pl.reciprocal(jnp.sum(ex, axis=1, keepdims=True), approx=False)

    # attention_context = bmm(attn.unsqueeze(1), enc).squeeze(1)
    ctx = jnp.sum(attn[:, :, None] * enc, axis=1)                         # (B, Ep)

    # GRU, one timestep.  cat([x, ctx]) @ W_ih split into two dots so no
    # lane-axis concatenate is needed in-kernel.  Gate blocks are Hp-wide,
    # hence 128-lane aligned slices.
    gi = (jnp.dot(x, wih_x_ref[...], preferred_element_type=f32)
          + jnp.dot(ctx, wih_c_ref[...], preferred_element_type=f32)
          + bih_ref[...])
    gh = jnp.dot(hid, whh_ref[...], preferred_element_type=f32) + bhh_ref[...]
    r = jax.nn.sigmoid(gi[:, :Hp] + gh[:, :Hp])
    z = jax.nn.sigmoid(gi[:, Hp:2 * Hp] + gh[:, Hp:2 * Hp])
    n = jnp.tanh(gi[:, 2 * Hp:] + r * gh[:, 2 * Hp:])
    h_new = (1.0 - z) * n + z * hid

    hout_ref[...] = h_new

    # Concatenated fcout activation.  Pp, Ep, Hp are all multiples of 128, so
    # these three stores are unmasked, lane-dense, 128-aligned.
    bf = fcin_ref.dtype
    fcin_ref[:, :Pp] = x.astype(bf)
    fcin_ref[:, Pp:Pp + Ep] = ctx.astype(bf)
    fcin_ref[:, Pp + Ep:] = h_new.astype(bf)


# ---------------------------------------------------------------------------
# Kernel B: HBM-bound fcout weight streaming.  One fused dot per column tile;
# per-tile output blocks are independent -> "parallel" grid axis.
# ---------------------------------------------------------------------------
def _fcout_tile_kernel(fcin_ref, wfc_ref, bfc_ref, logits_ref):
    logits_ref[...] = (
        jnp.dot(fcin_ref[...], wfc_ref[...], preferred_element_type=jnp.float32)
        + bfc_ref[...])


# ---------------------------------------------------------------------------
# Kernel C: exact row softmax over the padded logits (padded columns carry a
# -1e9 bias, so exp() underflows to 0 there).
# ---------------------------------------------------------------------------
def _row_softmax_kernel(logits_ref, pred_ref):
    lg = logits_ref[...]
    m = jnp.max(lg, axis=1, keepdims=True)
    e = jnp.exp(lg - m)
    s = jnp.sum(e, axis=1, keepdims=True)
    # Exact (non-approx) reciprocal: returned probabilities must sum to 1.
    pred_ref[...] = e * pl.reciprocal(s, approx=False)


def _round_up(x, m):
    return ((x + m - 1) // m) * m


def _device_vmem_bytes(default_bytes=64 << 20):
    """Physical VMEM of the attached TPU, with a safe fallback (perf item 2)."""
    try:
        cap = int(pltpu.get_tpu_info().vmem_capacity_bytes)
        return cap if cap > 0 else default_bytes
    except Exception:
        return default_bytes


def _pick_tile_n(pp, dp, b, vmem_budget):
    """Largest fcout column tile that fits the VMEM budget (perf item 6)."""
    resident = b * dp * 2                           # fcin (bf16), single-buffered
    for tn in (1024, 512, 256, 128):
        if pp % tn:
            continue
        streamed = 2 * tn * (dp * 2 + 4 + b * 4)    # double-buffered wfc+bfc+logits
        if resident + streamed + (4 << 20) <= vmem_budget:
            return tn
    return 128 if pp % 128 == 0 else pp


def decoder1_forward(encoder_outputs, decoder_hidden, input_img, params, *, tile_n=None):
    """Decoder1.forward as three Pallas calls:
       A) attention + single-step GRU (tiny, f32, ungridded),
       B) fused fcout projection streamed over column tiles ("parallel" grid),
       C) exact row softmax over the padded logits."""
    B, S, E = encoder_outputs.shape
    H = decoder_hidden.shape[1]
    P = input_img.shape[1] * input_img.shape[2]
    A = params["wah"].shape[1]

    Hp = _round_up(H, 128)
    Pp = _round_up(P, 128)
    Ap = _round_up(A, 128)
    Ep = _round_up(E, 128)
    Dp = Pp + Ep + Hp                               # fused fcout fan-in

    f32, bf16 = jnp.float32, jnp.bfloat16
    vmem_cap = _device_vmem_bytes()

    tn = tile_n if tile_n is not None else _pick_tile_n(Pp, Dp, B, vmem_cap - (8 << 20))
    assert Pp % tn == 0
    nt = Pp // tn

    def pad2(w, rows, cols, fill=0.0):
        r, c = w.shape
        return jnp.pad(w, ((0, rows - r), (0, cols - c)), constant_values=fill)

    def pad_gates(w, h, hp):
        # (rows, 3h) -> (rows, 3hp): zero-pad each gate block (r|z|n) to hp lanes.
        return jnp.concatenate(
            [jnp.pad(w[:, g * h:(g + 1) * h], ((0, 0), (0, hp - h))) for g in range(3)],
            axis=1)

    # ---- activations (f32 into the attention/GRU kernel; padding lanes = 0) ----
    enc = jnp.pad(encoder_outputs.astype(f32), ((0, 0), (0, 0), (0, Ep - E)))
    hid = pad2(decoder_hidden.astype(f32), B, Hp)
    x = pad2(input_img.reshape(B, P).astype(f32), B, Pp)

    # ---- attention parameters ----
    wah = pad2(params["wah"], Hp, Ap).astype(f32)
    wae = pad2(params["wae"], Ep, Ap).astype(f32)
    ba = pad2(params["ba"], 1, Ap).astype(f32)
    va = pad2(params["va"], 1, Ap).astype(f32)

    # ---- GRU parameters: split the concatenated-input weight, pad gates ----
    wih_x = pad2(pad_gates(params["wih"][:P], H, Hp), Pp, 3 * Hp).astype(f32)
    wih_c = pad2(pad_gates(params["wih"][P:P + E], H, Hp), Ep, 3 * Hp).astype(f32)
    whh = pad2(pad_gates(params["whh"], H, Hp), Hp, 3 * Hp).astype(f32)
    bih = pad_gates(params["bih"], H, Hp).astype(f32)
    bhh = pad_gates(params["bhh"], H, Hp).astype(f32)

    # ---- fused fcout weight: rows [x-part ; ctx-part ; h-part], each block
    #      zero-padded to a 128-multiple; columns padded P -> Pp.  A -1e9 bias
    #      in the padded columns makes the final softmax ignore them exactly. ----
    wfc = params["wfc"]
    wfc_cat = jnp.concatenate(
        [pad2(wfc[:P], Pp, Pp),
         pad2(wfc[P:P + E], Ep, Pp),
         pad2(wfc[P + E:], Hp, Pp)], axis=0).astype(bf16)          # (Dp, Pp)
    bfc = pad2(params["bfc"], 1, Pp, fill=-1e9).astype(f32)

    # ------------------ kernel A: attention + GRU (runs once) ------------------
    a_args = (enc, hid, x, wah, wae, ba, va, wih_x, wih_c, whh, bih, bhh)
    a_bytes = sum(int(v.size) * v.dtype.itemsize for v in a_args)
    a_bytes += B * Dp * 2 + B * Hp * 4
    a_limit = int(min(vmem_cap - (4 << 20), max(2 * a_bytes + (8 << 20), 32 << 20)))

    fcin, h_new_pad = pl.pallas_call(
        _attn_gru_kernel,
        out_shape=(jax.ShapeDtypeStruct((B, Dp), bf16),
                   jax.ShapeDtypeStruct((B, Hp), f32)),
        compiler_params=pltpu.CompilerParams(vmem_limit_bytes=a_limit),
    )(*a_args)

    # ----------- kernel B: stream wfc column tiles, one dot per tile -----------
    resident = B * Dp * 2
    streamed = 2 * tn * (Dp * 2 + 4 + B * 4)
    b_limit = int(min(vmem_cap - (4 << 20),
                      max(resident + streamed + (8 << 20), 32 << 20)))
    cost = pl.CostEstimate(
        flops=int(2 * B * Dp * Pp),
        transcendentals=0,
        bytes_accessed=int(Dp * Pp * 2 + B * Dp * 2 + Pp * 4 + B * Pp * 4),
    )

    def _call_fcout(single_buffer_resident):
        if single_buffer_resident:
            # Perf item 1: the constant-index-map resident activation does not
            # need double buffering.
            fcin_spec = pl.BlockSpec((B, Dp), lambda j: (0, 0),
                                     pipeline_mode=pl.Buffered(1))
        else:
            fcin_spec = pl.BlockSpec((B, Dp), lambda j: (0, 0))
        return pl.pallas_call(
            _fcout_tile_kernel,
            out_shape=jax.ShapeDtypeStruct((B, Pp), f32),
            grid_spec=pltpu.PrefetchScalarGridSpec(
                num_scalar_prefetch=0,
                grid=(nt,),
                in_specs=[
                    fcin_spec,
                    pl.BlockSpec((Dp, tn), lambda j: (0, j)),   # streamed weight
                    pl.BlockSpec((1, tn), lambda j: (0, j)),    # streamed bias
                ],
                out_specs=pl.BlockSpec((B, tn), lambda j: (0, j)),
            ),
            compiler_params=pltpu.CompilerParams(
                # Per-tile outputs are independent, so both v7x TensorCores can
                # each stream half of wfc (perf item 3); no-op on v5e/v6e.
                dimension_semantics=("parallel",),
                vmem_limit_bytes=b_limit,
            ),
            cost_estimate=cost,
        )(fcin, wfc_cat, bfc)

    try:
        logits = _call_fcout(True)
    except Exception:
        # Fallback for JAX builds that reject single-buffering via pipeline_mode.
        logits = _call_fcout(False)

    # --------------- kernel C: exact softmax over the padded row ---------------
    c_limit = int(min(vmem_cap - (4 << 20), max(4 * B * Pp * 4 + (8 << 20), 32 << 20)))
    pred_pad = pl.pallas_call(
        _row_softmax_kernel,
        out_shape=jax.ShapeDtypeStruct((B, Pp), f32),
        compiler_params=pltpu.CompilerParams(vmem_limit_bytes=c_limit),
    )(logits)

    return pred_pad[:, :P], h_new_pad[:, :H]


def _reference_forward(encoder_outputs, decoder_hidden, input_img, params):
    """Pure-JAX f32 reference of the same math (ground truth for the check)."""
    B, S, E = encoder_outputs.shape
    H = decoder_hidden.shape[1]
    P = input_img.shape[1] * input_img.shape[2]
    x = input_img.reshape(B, P)

    with jax.default_matmul_precision("float32"):
        e_lin = jnp.einsum("bse,ea->bsa", encoder_outputs, params["wae"])
        h_lin = decoder_hidden @ params["wah"]
        energy = jnp.tanh(e_lin + h_lin[:, None, :] + params["ba"][None, :, :])
        scores = jnp.sum(energy * params["va"][None, :, :], axis=-1)
        attn = jax.nn.softmax(scores, axis=1)
        ctx = jnp.einsum("bs,bse->be", attn, encoder_outputs)

        xcat = jnp.concatenate([x, ctx], axis=1)
        gi = xcat @ params["wih"] + params["bih"]
        gh = decoder_hidden @ params["whh"] + params["bhh"]
        r = jax.nn.sigmoid(gi[:, :H] + gh[:, :H])
        z = jax.nn.sigmoid(gi[:, H:2 * H] + gh[:, H:2 * H])
        n = jnp.tanh(gi[:, 2 * H:] + r * gh[:, 2 * H:])
        h_new = (1.0 - z) * n + z * decoder_hidden

        fc_in = jnp.concatenate([x, ctx, h_new], axis=1)
        logits = fc_in @ params["wfc"] + params["bfc"]
        pred = jax.nn.softmax(logits, axis=1)
    return pred, h_new


def make_params(key, encoder_hidden_dim, image_dim, decoder_hidden_dim):
    """Deterministic parameter init (PyTorch-style uniform(-1/sqrt(fan_in), +))."""
    E = 2 * encoder_hidden_dim
    H = decoder_hidden_dim
    A = decoder_hidden_dim          # attention hidden size
    P = image_dim * image_dim
    I = P + E                       # GRU input size

    def unif(k, shape, fan_in):
        bound = 1.0 / jnp.sqrt(fan_in)
        return jax.random.uniform(k, shape, jnp.float32, -bound, bound)

    ks = jax.random.split(key, 11)
    return {
        # attention: Linear(E+H -> A) split into hidden/encoder parts, plus v
        "wah": unif(ks[0], (H, A), E + H),
        "wae": unif(ks[1], (E, A), E + H),
        "ba":  unif(ks[2], (1, A), E + H),
        "va":  unif(ks[3], (1, A), A),
        # GRU (r|z|n packed along fan_out), input rows ordered [x ; ctx]
        "wih": unif(ks[4], (I, 3 * H), H),
        "whh": unif(ks[5], (H, 3 * H), H),
        "bih": unif(ks[6], (1, 3 * H), H),
        "bhh": unif(ks[7], (1, 3 * H), H),
        # fcout: Linear(P + E + H -> P), input rows ordered [x ; ctx ; h]
        "wfc": unif(ks[8], (P + E + H, P), P + E + H),
        "bfc": unif(ks[9], (1, P), P + E + H),
    }


if __name__ == "__main__":
    # Small, forward-consistent shapes (B >= 8 fills the sublanes; P = 256 so
    # tile_n=128 exercises the multi-tile "parallel" streaming path).
    B = 8
    S = 8                     # encoder sequence length
    encoder_hidden_dim = 16   # -> E = 32
    image_dim = 16            # -> P = 256
    decoder_hidden_dim = 32   # -> H = 32

    key = jax.random.PRNGKey(0)
    k_enc, k_hid, k_img, k_par = jax.random.split(key, 4)

    encoder_outputs = jax.random.normal(
        k_enc, (B, S, 2 * encoder_hidden_dim), jnp.float32)
    decoder_hidden = jax.random.normal(k_hid, (B, decoder_hidden_dim), jnp.float32)
    input_img = jax.random.normal(k_img, (B, image_dim, image_dim), jnp.float32)
    params = make_params(k_par, encoder_hidden_dim, image_dim, decoder_hidden_dim)

    pred, h_new = decoder1_forward(
        encoder_outputs, decoder_hidden, input_img, params, tile_n=128)
    jax.block_until_ready((pred, h_new))

    pred_ref, h_ref = _reference_forward(encoder_outputs, decoder_hidden,
                                         input_img, params)
    assert pred.shape == (B, image_dim * image_dim)
    assert h_new.shape == (B, decoder_hidden_dim)
    # h runs through f32 in-kernel math (tolerance absorbs possible bf16 MXU
    # contraction passes); pred's logits use bf16 MXU operands but softmax
    # probabilities are small so absolute errors are tiny.
    assert jnp.allclose(h_new, h_ref, rtol=2e-2, atol=2e-2), (
        "h max err %e" % float(jnp.max(jnp.abs(h_new - h_ref))))
    assert jnp.allclose(pred, pred_ref, rtol=2e-2, atol=5e-3), (
        "pred max err %e" % float(jnp.max(jnp.abs(pred - pred_ref))))
    assert bool(jnp.all(jnp.isfinite(pred))) and bool(jnp.all(jnp.isfinite(h_new)))

    print("KERNEL_OK")
</pallas_src>

<mosaic_0001>
module attributes {stable_mosaic.version = 11 : i64} {
  func.func @_attn_gru_kernel(%arg0: memref<8x8x128xf32, #tpu.memory_space<vmem>>, %arg1: memref<8x128xf32, #tpu.memory_space<vmem>>, %arg2: memref<8x256xf32, #tpu.memory_space<vmem>>, %arg3: memref<128x128xf32, #tpu.memory_space<vmem>>, %arg4: memref<128x128xf32, #tpu.memory_space<vmem>>, %arg5: memref<1x128xf32, #tpu.memory_space<vmem>>, %arg6: memref<1x128xf32, #tpu.memory_space<vmem>>, %arg7: memref<256x384xf32, #tpu.memory_space<vmem>>, %arg8: memref<128x384xf32, #tpu.memory_space<vmem>>, %arg9: memref<128x384xf32, #tpu.memory_space<vmem>>, %arg10: memref<1x384xf32, #tpu.memory_space<vmem>>, %arg11: memref<1x384xf32, #tpu.memory_space<vmem>>, %arg12: memref<8x512xbf16, #tpu.memory_space<vmem>>, %arg13: memref<8x128xf32, #tpu.memory_space<vmem>>) attributes {dimension_semantics = [], scalar_prefetch = 0 : i64, scratch_operands = 0 : i64, tpu.core_type = #tpu.core_type<tc>} {
    %c0 = arith.constant 0 : index
    %c0_0 = arith.constant 0 : index
    %c0_1 = arith.constant 0 : index
    %0 = vector.load %arg0[%c0, %c0_0, %c0_1] : memref<8x8x128xf32, #tpu.memory_space<vmem>>, vector<8x8x128xf32>
    %c0_2 = arith.constant 0 : index
    %c0_3 = arith.constant 0 : index
    %1 = vector.load %arg1[%c0_2, %c0_3] : memref<8x128xf32, #tpu.memory_space<vmem>>, vector<8x128xf32>
    %c0_4 = arith.constant 0 : index
    %c0_5 = arith.constant 0 : index
    %2 = vector.load %arg2[%c0_4, %c0_5] : memref<8x256xf32, #tpu.memory_space<vmem>>, vector<8x256xf32>
    %3 = vector.shape_cast %0 : vector<8x8x128xf32> to vector<64x128xf32>
    %c0_6 = arith.constant 0 : index
    %c0_7 = arith.constant 0 : index
    %4 = vector.load %arg4[%c0_6, %c0_7] : memref<128x128xf32, #tpu.memory_space<vmem>>, vector<128x128xf32>
    %cst = arith.constant dense<0.000000e+00> : vector<64x128xf32>
    %5 = tpu.matmul %3, %4, %cst {dimension_numbers = #tpu.dot_dimension_numbers<[1], [0], [0], [1], [0, 0, 1, 1], [], []>} : vector<64x128xf32>, vector<128x128xf32>, vector<64x128xf32> -> vector<64x128xf32>
    %6 = vector.shape_cast %5 : vector<64x128xf32> to vector<8x8x128xf32>
    %c0_8 = arith.constant 0 : index
    %c0_9 = arith.constant 0 : index
    %7 = vector.load %arg3[%c0_8, %c0_9] : memref<128x128xf32, #tpu.memory_space<vmem>>, vector<128x128xf32>
    %cst_10 = arith.constant dense<0.000000e+00> : vector<8x128xf32>
    %8 = tpu.matmul %1, %7, %cst_10 {dimension_numbers = #tpu.dot_dimension_numbers<[1], [0], [0], [1], [0, 0, 1, 1], [], []>} : vector<8x128xf32>, vector<128x128xf32>, vector<8x128xf32> -> vector<8x128xf32>
    %9 = vector.shape_cast %8 : vector<8x128xf32> to vector<8x1x128xf32>
    %10 = vector.broadcast %9 : vector<8x1x128xf32> to vector<8x8x128xf32>
    %11 = arith.addf %6, %10 : vector<8x8x128xf32>
    %c0_11 = arith.constant 0 : index
    %c0_12 = arith.constant 0 : index
    %12 = vector.load %arg5[%c0_11, %c0_12] : memref<1x128xf32, #tpu.memory_space<vmem>>, vector<1x128xf32>
    %13 = vector.shape_cast %12 : vector<1x128xf32> to vector<1x1x128xf32>
    %14 = vector.broadcast %13 : vector<1x1x128xf32> to vector<8x8x128xf32>
    %15 = arith.addf %11, %14 : vector<8x8x128xf32>
    %16 = math.tanh %15 : vector<8x8x128xf32>
    %c0_13 = arith.constant 0 : index
    %c0_14 = arith.constant 0 : index
    %17 = vector.load %arg6[%c0_13, %c0_14] : memref<1x128xf32, #tpu.memory_space<vmem>>, vector<1x128xf32>
    %18 = vector.shape_cast %17 : vector<1x128xf32> to vector<1x1x128xf32>
    %19 = vector.broadcast %18 : vector<1x1x128xf32> to vector<8x8x128xf32>
    %20 = arith.mulf %16, %19 : vector<8x8x128xf32>
    %cst_15 = arith.constant dense<0.000000e+00> : vector<8x8xf32>
    %21 = vector.multi_reduction <add>, %20, %cst_15 [2] : vector<8x8x128xf32> to vector<8x8xf32>
    %cst_16 = arith.constant dense<0xFF800000> : vector<8xf32>
    %22 = vector.multi_reduction <maximumf>, %21, %cst_16 [1] : vector<8x8xf32> to vector<8xf32>
    %23 = vector.shape_cast %22 : vector<8xf32> to vector<8x1xf32>
    %24 = vector.broadcast %23 : vector<8x1xf32> to vector<8x8xf32>
    %25 = arith.subf %21, %24 : vector<8x8xf32>
    %26 = math.exp %25 : vector<8x8xf32>
    %cst_17 = arith.constant dense<0.000000e+00> : vector<8xf32>
    %27 = vector.multi_reduction <add>, %26, %cst_17 [1] : vector<8x8xf32> to vector<8xf32>
    %28 = vector.shape_cast %27 : vector<8xf32> to vector<8x1xf32>
    %29 = tpu.reciprocal %28 : vector<8x1xf32> -> vector<8x1xf32>
    %30 = vector.broadcast %29 : vector<8x1xf32> to vector<8x8xf32>
    %31 = arith.mulf %26, %30 : vector<8x8xf32>
    %32 = vector.shape_cast %31 : vector<8x8xf32> to vector<8x8x1xf32>
    %33 = vector.broadcast %32 : vector<8x8x1xf32> to vector<8x8x128xf32>
    %34 = arith.mulf %33, %0 : vector<8x8x128xf32>
    %cst_18 = arith.constant dense<0.000000e+00> : vector<8x128xf32>
    %35 = vector.multi_reduction <add>, %34, %cst_18 [1] : vector<8x8x128xf32> to vector<8x128xf32>
    %c0_19 = arith.constant 0 : index
    %c0_20 = arith.constant 0 : index
    %36 = vector.load %arg7[%c0_19, %c0_20] : memref<256x384xf32, #tpu.memory_space<vmem>>, vector<256x384xf32>
    %cst_21 = arith.constant dense<0.000000e+00> : vector<8x384xf32>
    %37 = tpu.matmul %2, %36, %cst_21 {dimension_numbers = #tpu.dot_dimension_numbers<[1], [0], [0], [1], [0, 0, 1, 1], [], []>} : vector<8x256xf32>, vector<256x384xf32>, vector<8x384xf32> -> vector<8x384xf32>
    %c0_22 = arith.constant 0 : index
    %c0_23 = arith.constant 0 : index
    %38 = vector.load %arg8[%c0_22, %c0_23] : memref<128x384xf32, #tpu.memory_space<vmem>>, vector<128x384xf32>
    %cst_24 = arith.constant dense<0.000000e+00> : vector<8x384xf32>
    %39 = tpu.matmul %35, %38, %cst_24 {dimension_numbers = #tpu.dot_dimension_numbers<[1], [0], [0], [1], [0, 0, 1, 1], [], []>} : vector<8x128xf32>, vector<128x384xf32>, vector<8x384xf32> -> vector<8x384xf32>
    %40 = arith.addf %37, %39 : vector<8x384xf32>
    %c0_25 = arith.constant 0 : index
    %c0_26 = arith.constant 0 : index
    %41 = vector.load %arg10[%c0_25, %c0_26] : memref<1x384xf32, #tpu.memory_space<vmem>>, vector<1x384xf32>
    %42 = vector.broadcast %41 : vector<1x384xf32> to vector<8x384xf32>
    %43 = arith.addf %40, %42 : vector<8x384xf32>
    %c0_27 = arith.constant 0 : index
    %c0_28 = arith.constant 0 : index
    %44 = vector.load %arg9[%c0_27, %c0_28] : memref<128x384xf32, #tpu.memory_space<vmem>>, vector<128x384xf32>
    %cst_29 = arith.constant dense<0.000000e+00> : vector<8x384xf32>
    %45 = tpu.matmul %1, %44, %cst_29 {dimension_numbers = #tpu.dot_dimension_numbers<[1], [0], [0], [1], [0, 0, 1, 1], [], []>} : vector<8x128xf32>, vector<128x384xf32>, vector<8x384xf32> -> vector<8x384xf32>
    %c0_30 = arith.constant 0 : index
    %c0_31 = arith.constant 0 : index
    %46 = vector.load %arg11[%c0_30, %c0_31] : memref<1x384xf32, #tpu.memory_space<vmem>>, vector<1x384xf32>
    %47 = vector.broadcast %46 : vector<1x384xf32> to vector<8x384xf32>
    %48 = arith.addf %45, %47 : vector<8x384xf32>
    %49 = vector.extract_strided_slice %43 {offsets = [0, 0], sizes = [8, 128], strides = [1, 1]} : vector<8x384xf32> to vector<8x128xf32>
    %50 = vector.extract_strided_slice %48 {offsets = [0, 0], sizes = [8, 128], strides = [1, 1]} : vector<8x384xf32> to vector<8x128xf32>
    %51 = arith.addf %49, %50 : vector<8x128xf32>
    %52 = arith.negf %51 : vector<8x128xf32>
    %53 = math.exp %52 : vector<8x128xf32>
    %cst_32 = arith.constant 1.000000e+00 : f32
    %54 = vector.broadcast %cst_32 : f32 to vector<8x128xf32>
    %55 = arith.addf %54, %53 : vector<8x128xf32>
    %56 = arith.divf %54, %55 : vector<8x128xf32>
    %57 = vector.extract_strided_slice %43 {offsets = [0, 128], sizes = [8, 128], strides = [1, 1]} : vector<8x384xf32> to vector<8x128xf32>
    %58 = vector.extract_strided_slice %48 {offsets = [0, 128], sizes = [8, 128], strides = [1, 1]} : vector<8x384xf32> to vector<8x128xf32>
    %59 = arith.addf %57, %58 : vector<8x128xf32>
    %60 = arith.negf %59 : vector<8x128xf32>
    %61 = math.exp %60 : vector<8x128xf32>
    %cst_33 = arith.constant 1.000000e+00 : f32
    %62 = vector.broadcast %cst_33 : f32 to vector<8x128xf32>
    %63 = arith.addf %62, %61 : vector<8x128xf32>
    %64 = arith.divf %62, %63 : vector<8x128xf32>
    %65 = vector.extract_strided_slice %43 {offsets = [0, 256], sizes = [8, 128], strides = [1, 1]} : vector<8x384xf32> to vector<8x128xf32>
    %66 = vector.extract_strided_slice %48 {offsets = [0, 256], sizes = [8, 128], strides = [1, 1]} : vector<8x384xf32> to vector<8x128xf32>
    %67 = arith.mulf %56, %66 : vector<8x128xf32>
    %68 = arith.addf %65, %67 : vector<8x128xf32>
    %69 = math.tanh %68 : vector<8x128xf32>
    %cst_34 = arith.constant 1.000000e+00 : f32
    %70 = vector.broadcast %cst_34 : f32 to vector<8x128xf32>
    %71 = arith.subf %70, %64 : vector<8x128xf32>
    %72 = arith.mulf %71, %69 : vector<8x128xf32>
    %73 = arith.mulf %64, %1 : vector<8x128xf32>
    %74 = arith.addf %72, %73 : vector<8x128xf32>
    %c0_35 = arith.constant 0 : index
    %c0_36 = arith.constant 0 : index
    %75 = vector.load %arg13[%c0_35, %c0_36] : memref<8x128xf32, #tpu.memory_space<vmem>>, vector<8x128xf32>
    tpu.vector_store %arg13[%c0_35, %c0_36], %74 {strides = array<i32>} : memref<8x128xf32, #tpu.memory_space<vmem>>, vector<8x128xf32>,
    %76 = arith.truncf %2 : vector<8x256xf32> to vector<8x256xbf16>
    %c0_37 = arith.constant 0 : index
    %c0_38 = arith.constant 0 : index
    %77 = vector.load %arg12[%c0_37, %c0_38] : memref<8x512xbf16, #tpu.memory_space<vmem>>, vector<8x256xbf16>
    tpu.vector_store %arg12[%c0_37, %c0_38], %76 {strides = array<i32>} : memref<8x512xbf16, #tpu.memory_space<vmem>>, vector<8x256xbf16>,
    %78 = arith.truncf %35 : vector<8x128xf32> to vector<8x128xbf16>
    %c0_39 = arith.constant 0 : index
    %c256 = arith.constant 256 : index
    %79 = vector.load %arg12[%c0_39, %c256] : memref<8x512xbf16, #tpu.memory_space<vmem>>, vector<8x128xbf16>
    tpu.vector_store %arg12[%c0_39, %c256], %78 {strides = array<i32>} : memref<8x512xbf16, #tpu.memory_space<vmem>>, vector<8x128xbf16>,
    %80 = arith.truncf %74 : vector<8x128xf32> to vector<8x128xbf16>
    %c0_40 = arith.constant 0 : index
    %c384 = arith.constant 384 : index
    %81 = vector.load %arg12[%c0_40, %c384] : memref<8x512xbf16, #tpu.memory_space<vmem>>, vector<8x128xbf16>
    tpu.vector_store %arg12[%c0_40, %c384], %80 {strides = array<i32>} : memref<8x512xbf16, #tpu.memory_space<vmem>>, vector<8x128xbf16>,
    return
  }
}

</mosaic_0001>

<bundles_post_ra>
// kernel: tpu_custom_call.1
= control target key start
LH: loop header
LB: loop body
LE: loop exit
PB: predicated region body
PF: predicated region fallthrough
CT: control target
= control target key end

     0   :  { %19 = vsyncpa [#allocation3], 0  ;;  %s2938_s0 = inlined_call_operand.hbm [shape: f32[8,8,128], index: 0, kind: input, shape index: {}]   ;;  %s2939_s1 = inlined_call_operand.hbm [shape: f32[8,128], index: 1, kind: input, shape index: {}]   ;;  %s2940_s2 = inlined_call_operand.hbm [shape: f32[8,256], index: 2, kind: input, shape index: {}]   ;;  %s2941_s3 = inlined_call_operand.hbm [shape: f32[128,128], index: 3, kind: input, shape index: {}]   ;;  %s2942_s4 = inlined_call_operand.hbm [shape: f32[128,128], index: 4, kind: input, shape index: {}]   ;;  %s2943_s5 = inlined_call_operand.vmem [shape: f32[1,128], index: 5, kind: input, shape index: {}]   ;;  %s2944_s6 = inlined_call_operand.vmem [shape: f32[1,128], index: 6, kind: input, shape index: {}]   ;;  %s2945_s7 = inlined_call_operand.hbm [shape: f32[256,384], index: 7, kind: input, shape index: {}]   ;;  %s2946_s8 = inlined_call_operand.hbm [shape: f32[128,384], index: 8, kind: input, shape index: {}]   ;;  %s2947_s9 = inlined_call_operand.hbm [shape: f32[128,384], index: 9, kind: input, shape index: {}]   ;;  %s2948_s10 = inlined_call_operand.vmem [shape: f32[1,384], index: 10, kind: input, shape index: {}]   ;;  %s2949_s11 = inlined_call_operand.vmem [shape: f32[1,384], index: 11, kind: input, shape index: {}]   ;;  %s2950_s12 = inlined_call_operand.hbm [shape: bf16[8,512], index: 12, kind: output, shape index: {0}]   ;;  %s2951_s13 = inlined_call_operand.hbm [shape: f32[8,128], index: 13, kind: output, shape index: {1}]  }
   0x1   :  { %20 = vsyncpa [#allocation6], 0 }
   0x2   :  { %21 = vsyncpa [#allocation9], 0 }
   0x3   :  { %22 = vsyncpa [#allocation12], 0 }
   0x4   :  { %23 = vsyncpa [#allocation15], 0 }
   0x5   :  { %24 = vsyncpa [#allocation4], 0 }
   0x6   :  { %25 = vsyncpa [#allocation18], 0  ;;  %s2504_s25 = smov [#allocation5]   ;;  %s2270_s29 = scalar_lea.hbm %s2939_s1, 128 }
   0x7   :  { %s44_s26 = sshll.u32 %s2504_s25, 4  ;;  %p2271_p0 = scmp.ne.s32.totalorder %s2939_s1, %s2270_s29  ;;  %s45_s26 = int_to_ptr.vmem [resolvable:$true] %s44_s26 }
   0x8   :  { %p2274_p1 = scmp.lt.u32.totalorder %s2270_s29, %s2939_s1 }
   0xa   :  { %p2276_p2 = pnand %p2274_p1, %p2271_p0 }
   0xc   :  { %2279 = shalt.err (!%p2276_p2)
}
   0xd   :  { %s2280_s17 = scalar_lea.vmem %s45_s26, 128  ;;  %p2285_p4 = scmp.lt.s32.totalorder %s45_s26, %s45_s26 }
   0xe   :  { %p2281_p3 = scmp.ne.s32.totalorder %s45_s26, %s2280_s17  ;;  %p2286_p5 = scmp.lt.s32.totalorder %s2280_s17, %s2280_s17 }
  0x10   :  { %p2287_p6 = por %p2286_p5, %p2285_p4 }
  0x12   :  { %p2288_p7 = pnand %p2287_p6, %p2281_p3 }
  0x14   :  { %2291 = shalt.err (!%p2288_p7)
}
  0x15   :  { %47 = dma.hbm_to_vmem [thread:$0]  %s2939_s1, 128, %s45_s26, [#allocation6]  }
  0x16   :  { %s2505_s20 = smov [#allocation8]   ;;  %s2506_s22 = smov [#allocation11]  }
  0x17   :  { %s63_s21 = sshll.u32 %s2505_s20, 4  ;;  %s91_s23 = sshll.u32 %s2506_s22, 4  ;;  %s64_s21 = int_to_ptr.vmem [resolvable:$true] %s63_s21  ;;  %s92_s23 = int_to_ptr.vmem [resolvable:$true] %s91_s23 }
  0x18   :  { %s2292_s27 = scalar_lea.hbm %s2941_s3, 2048 }
  0x19   :  { %p2293_p8 = scmp.ne.s32.totalorder %s2941_s3, %s2292_s27  ;;  %p2296_p9 = scmp.lt.u32.totalorder %s2292_s27, %s2941_s3 }
  0x1b   :  { %p2298_p10 = pnand %p2296_p9, %p2293_p8 }
  0x1d   :  { %2301 = shalt.err (!%p2298_p10)
}
  0x1e   :  { %s2302_s1 = scalar_lea.vmem %s64_s21, 2048  ;;  %p2307_p12 = scmp.lt.s32.totalorder %s64_s21, %s64_s21 }
  0x1f   :  { %p2303_p11 = scmp.ne.s32.totalorder %s64_s21, %s2302_s1  ;;  %p2308_p13 = scmp.lt.s32.totalorder %s2302_s1, %s2302_s1 }
  0x21   :  { %p2309_p0 = por %p2308_p13, %p2307_p12 }
  0x23   :  { %p2310_p1 = pnand %p2309_p0, %p2303_p11 }
  0x25   :  { %2313 = shalt.err (!%p2310_p1)
}
  0x26   :  { %s2507_s26 = smov 128   ;;  %s2508_s15 = smov 8  }
  0x27   :  { %69 = dma.hbm_to_vmem [thread:$0]  %s2941_s3, 2048, %s64_s21, [#allocation9], %s2507_s26, %s2507_s26, %s2508_s15  }
  0x28   :  { %s2314_s20 = scalar_lea.hbm %s2945_s7, 12288 }
  0x29   :  { %p2315_p2 = scmp.ne.s32.totalorder %s2945_s7, %s2314_s20  ;;  %p2318_p3 = scmp.lt.u32.totalorder %s2314_s20, %s2945_s7 }
  0x2b   :  { %p2320_p4 = pnand %p2318_p3, %p2315_p2 }
  0x2d   :  { %2323 = shalt.err (!%p2320_p4)
}
  0x2e   :  { %s2324_s28 = scalar_lea.vmem %s92_s23, 12288  ;;  %p2329_p6 = scmp.lt.s32.totalorder %s92_s23, %s92_s23 }
  0x2f   :  { %p2325_p5 = scmp.ne.s32.totalorder %s92_s23, %s2324_s28  ;;  %p2330_p7 = scmp.lt.s32.totalorder %s2324_s28, %s2324_s28 }
  0x31   :  { %p2331_p8 = por %p2330_p7, %p2329_p6 }
  0x33   :  { %p2332_p9 = pnand %p2331_p8, %p2325_p5 }
  0x35   :  { %2335 = shalt.err (!%p2332_p9)
}
  0x36   :  { %s2509_s3 = smov 384   ;;  %s2510_s21 = smov 24  }
  0x37   :  { %97 = dma.hbm_to_vmem [thread:$0]  %s2945_s7, 12288, %s92_s23, [#allocation12], %s2509_s3, %s2509_s3, %s2510_s21  }
  0x38   :  { %s2511_s14 = smov [#allocation2]   ;;  %s2512_s16 = smov [#allocation7]  }
  0x39   :  { %s31_s1 = sshll.u32 %s2511_s14, 4  ;;  %s54_s17 = sshll.u32 %s2512_s16, 4  ;;  %s32_s1 = int_to_ptr.vmem [resolvable:$true] %s31_s1  ;;  %s55_s17 = int_to_ptr.vmem [resolvable:$true] %s54_s17 }
  0x3a   :  { %s2336_s20 = scalar_lea.hbm %s2938_s0, 1024 }
  0x3b   :  { %p2337_p10 = scmp.ne.s32.totalorder %s2938_s0, %s2336_s20  ;;  %p2340_p11 = scmp.lt.u32.totalorder %s2336_s20, %s2938_s0 }
  0x3d   :  { %p2342_p12 = pnand %p2340_p11, %p2337_p10 }
  0x3f   :  { %2345 = shalt.err (!%p2342_p12)
}
  0x40   :  { %s2346_s7 = scalar_lea.vmem %s32_s1, 1024  ;;  %p2351_p0 = scmp.lt.s32.totalorder %s32_s1, %s32_s1 }
  0x41   :  { %p2347_p13 = scmp.ne.s32.totalorder %s32_s1, %s2346_s7  ;;  %p2352_p1 = scmp.lt.s32.totalorder %s2346_s7, %s2346_s7 }
  0x43   :  { %p2353_p2 = por %p2352_p1, %p2351_p0 }
  0x45   :  { %p2354_p3 = pnand %p2353_p2, %p2347_p13 }
  0x47   :  { %2357 = shalt.err (!%p2354_p3)
}
  0x48   :  { %37 = dma.hbm_to_vmem [thread:$0]  %s2938_s0, 1024, %s32_s1, [#allocation3], %s2507_s26, %s2507_s26, %s2508_s15  }
  0x49   :  { %s2358_s14 = scalar_lea.hbm %s2940_s2, 256 }
  0x4a   :  { %p2359_p4 = scmp.ne.s32.totalorder %s2940_s2, %s2358_s14  ;;  %p2362_p5 = scmp.lt.u32.totalorder %s2358_s14, %s2940_s2 }
  0x4c   :  { %p2364_p6 = pnand %p2362_p5, %p2359_p4 }
  0x4e   :  { %2367 = shalt.err (!%p2364_p6)
}
  0x4f   :  { %s2368_s22 = scalar_lea.vmem %s55_s17, 256  ;;  %p2373_p8 = scmp.lt.s32.totalorder %s55_s17, %s55_s17 }
  0x50   :  { %p2369_p7 = scmp.ne.s32.totalorder %s55_s17, %s2368_s22  ;;  %p2374_p9 = scmp.lt.s32.totalorder %s2368_s22, %s2368_s22 }
  0x52   :  { %p2375_p10 = por %p2374_p9, %p2373_p8 }
  0x54   :  { %p2376_p11 = pnand %p2375_p10, %p2369_p7 }
  0x56   :  { %2379 = shalt.err (!%p2376_p11)
}
  0x57   :  { %57 = dma.hbm_to_vmem [thread:$0]  %s2940_s2, 256, %s55_s17, [#allocation6]  }
  0x58   :  { %s2513_s24 = smov [#allocation10]   ;;  %s2514_s27 = smov [#allocation13]  }
  0x59   :  { %s75_s25 = sshll.u32 %s2513_s24, 4  ;;  %s103_s7 = sshll.u32 %s2514_s27, 4  ;;  %s76_s25 = int_to_ptr.vmem [resolvable:$true] %s75_s25  ;;  %s104_s7 = int_to_ptr.vmem [resolvable:$true] %s103_s7 }
  0x5a   :  { %s2380_s29 = scalar_lea.hbm %s2942_s4, 2048 }
  0x5b   :  { %p2381_p12 = scmp.ne.s32.totalorder %s2942_s4, %s2380_s29  ;;  %p2384_p13 = scmp.lt.u32.totalorder %s2380_s29, %s2942_s4 }
  0x5d   :  { %p2386_p0 = pnand %p2384_p13, %p2381_p12 }
  0x5f   :  { %2389 = shalt.err (!%p2386_p0)
}
  0x60   :  { %s2390_s2 = scalar_lea.vmem %s76_s25, 2048  ;;  %p2395_p2 = scmp.lt.s32.totalorder %s76_s25, %s76_s25 }
  0x61   :  { %p2391_p1 = scmp.ne.s32.totalorder %s76_s25, %s2390_s2  ;;  %p2396_p3 = scmp.lt.s32.totalorder %s2390_s2, %s2390_s2 }
  0x63   :  { %p2397_p4 = por %p2396_p3, %p2395_p2 }
  0x65   :  { %p2398_p5 = pnand %p2397_p4, %p2391_p1 }
  0x67   :  { %2401 = shalt.err (!%p2398_p5)
}
  0x68   :  { %81 = dma.hbm_to_vmem [thread:$0]  %s2942_s4, 2048, %s76_s25, [#allocation9], %s2507_s26, %s2507_s26, %s2508_s15  }
  0x69   :  { %s2402_s0 = scalar_lea.hbm %s2946_s8, 6144 }
  0x6a   :  { %p2403_p6 = scmp.ne.s32.totalorder %s2946_s8, %s2402_s0  ;;  %p2406_p7 = scmp.lt.u32.totalorder %s2402_s0, %s2946_s8 }
  0x6c   :  { %p2408_p8 = pnand %p2406_p7, %p2403_p6 }
  0x6e   :  { %2411 = shalt.err (!%p2408_p8)
}
  0x6f   :  { %s2412_s28 = scalar_lea.vmem %s104_s7, 6144  ;;  %p2417_p10 = scmp.lt.s32.totalorder %s104_s7, %s104_s7 }
  0x70   :  { %p2413_p9 = scmp.ne.s32.totalorder %s104_s7, %s2412_s28  ;;  %p2418_p11 = scmp.lt.s32.totalorder %s2412_s28, %s2412_s28 }
  0x72   :  { %p2419_p12 = por %p2418_p11, %p2417_p10 }
  0x74   :  { %p2420_p13 = pnand %p2419_p12, %p2413_p9 }
  0x76   :  { %2423 = shalt.err (!%p2420_p13)
}
  0x77   :  { %109 = dma.hbm_to_vmem [thread:$0]  %s2946_s8, 6144, %s104_s7, [#allocation12], %s2509_s3, %s2509_s3, %s2510_s21  }
  0x78   :  { %s2515_s15 = smov [#allocation14]   ;;  %s2424_s14 = scalar_lea.hbm %s2947_s9, 6144 }
  0x79   :  { %s115_s25 = sshll.u32 %s2515_s15, 4  ;;  %p2425_p0 = scmp.ne.s32.totalorder %s2947_s9, %s2424_s14  ;;  %s116_s25 = int_to_ptr.vmem [resolvable:$true] %s115_s25 }
  0x7a   :  { %p2428_p1 = scmp.lt.u32.totalorder %s2424_s14, %s2947_s9 }
  0x7c   :  { %p2430_p2 = pnand %p2428_p1, %p2425_p0 }
  0x7e   :  { %2433 = shalt.err (!%p2430_p2)
}
  0x7f   :  { %s2434_s19 = scalar_lea.vmem %s116_s25, 6144  ;;  %p2439_p4 = scmp.lt.s32.totalorder %s116_s25, %s116_s25 }
  0x80   :  { %p2435_p3 = scmp.ne.s32.totalorder %s116_s25, %s2434_s19  ;;  %p2440_p5 = scmp.lt.s32.totalorder %s2434_s19, %s2434_s19 }
  0x82   :  { %p2441_p6 = por %p2440_p5, %p2439_p4 }
  0x84   :  { %p2442_p7 = pnand %p2441_p6, %p2435_p3 }
  0x86   :  { %2445 = shalt.err (!%p2442_p7)
}
  0x87   :  { %121 = dma.hbm_to_vmem [thread:$0]  %s2947_s9, 6144, %s116_s25, [#allocation15], %s2509_s3, %s2509_s3, %s2510_s21  }
  0x88   :  { %2490 = dma.done.wait [#allocation3], 1024  }
  0x89   :  { %2491 = vsyncadd [#allocation3], 4294966272 }
  0x8a   :  { %2492 = dma.done.wait [#allocation6], 384  }
  0x8b   :  { %2493 = vsyncadd [#allocation6], 4294966912 }
  0x8c   :  { %2494 = dma.done.wait [#allocation9], 4096  }
  0x8d   :  { %2495 = vsyncadd [#allocation9], 4294963200 }
  0x8e   :  { %2496 = dma.done.wait [#allocation12], 18432  }
  0x8f   :  { %2497 = vsyncadd [#allocation12], 4294948864 }
  0x90   :  { %2498 = dma.done.wait [#allocation15], 6144  }
  0x91   :  { %2499 = vsyncadd [#allocation15], 4294961152  ;;  %v2516_v0 = vmov 0.0|0.0   ;;  %vm2517_vm0 = vmmov 0   ;;  %v2518_v1 = vmov 0.0   ;;  %v161_v2 = vld [vmem:[#allocation10] sm:$0xff]  ;;  %v373_v61 = vlaneseq }
  0x92   :  { %1964 = vmatprep.subr.bf16.mxu1 %v2516_v0  ;;  %1859 = vmatprep.mubr.msk.f32.mxu1 %vm2517_vm0, %v2518_v1  ;;  %v162_v3 = vld [vmem:[#allocation10 + $0x8] sm:$0xff]  ;;  %v282_v4 = vld [vmem:[#allocation8] sm:$0xff]  ;;  %v163_v7 = vld [vmem:[#allocation10 + $0x10] sm:$0xff]  ;;  %v2519_v59 = vmov 1966171168   ;;  %vm562_vm1 = vcmask 1041409  }
  0x93   :  { %v1932_v5 = vpack.c.bf16 %v162_v3, %v161_v2  ;;  %v283_v6 = vld [vmem:[#allocation8 + $0x8] sm:$0xff]  ;;  %v164_v8 = vld [vmem:[#allocation10 + $0x18] sm:$0xff]  ;;  %v284_v11 = vld [vmem:[#allocation8 + $0x10] sm:$0xff]  ;;  %v371_v60 = vunpack.c.l.s4 %v2519_v59  ;;  %v2746_v63 = vshrl.u32 %v373_v61, 7  ;;  %vm564_vm2 = vcmask 1042434   ;;  %s2522_s1 = smov [#allocation16]  }
  0x94   :  { %v1965_v9 = vpack.c.bf16 %v283_v6, %v282_v4  ;;  %v1936_v10 = vpack.c.bf16 %v164_v8, %v163_v7  ;;  %v285_v12 = vld [vmem:[#allocation8 + $0x18] sm:$0xff]  ;;  %v165_v13 = vld [vmem:[#allocation10 + $0x20] sm:$0xff]  ;;  %v166_v14 = vld [vmem:[#allocation10 + $0x28] sm:$0xff]  ;;  %vm566_vm3 = vcmask 1043459   ;;  %vm568_vm4 = vcmask 1044484   ;;  %s1624_s24 = sshll.u32 %s2522_s1, 4  ;;  %s1625_s24 = int_to_ptr.vmem [resolvable:$true] %s1624_s24 }
  0x95   :  { %1933 = vmatprep.subr.bf16.mxu0 %v1932_v5  ;;  %v1968_v15 = vpack.c.bf16 %v285_v12, %v284_v11  ;;  %v1940_v16 = vpack.c.bf16 %v166_v14, %v165_v13  ;;  %v286_v17 = vld [vmem:[#allocation8 + $0x20] sm:$0xff]  ;;  %v287_v18 = vld [vmem:[#allocation8 + $0x28] sm:$0xff]  ;;  %v167_v19 = vld [vmem:[#allocation10 + $0x30] sm:$0xff]  ;;  %v372_v62 = vunpack.c.0.s8 %v371_v60  ;;  %v2750_v8 = vsub.s32 0, %v2746_v63 }
  0x96   :  { %1966 = vmatpush3.bf16.msra.mxu1 %v1965_v9  ;;  %1935 = vmatpush3.bf16.msra.mxu0 %v1932_v5  ;;  %v168_v20 = vld [vmem:[#allocation10 + $0x38] sm:$0xff]  ;;  %v1971_v21 = vpack.c.bf16 %v287_v18, %v286_v17  ;;  %v288_v23 = vld [vmem:[#allocation8 + $0x30] sm:$0xff]  ;;  %v169_v25 = vld [vmem:[#allocation10 + $0x40] sm:$0xff]  ;;  %vm570_vm5 = vcmask 1045509   ;;  %vm572_vm6 = vcmask 1046534   ;;  %vm574_vm7 = vcmask 1047559  }
  0x97   :  { %1967 = vmatprep.subr.bf16.mxu1 %v2516_v0  ;;  %1937 = vmatprep.subr.bf16.mxu0 %v1936_v10  ;;  %v1944_v22 = vpack.c.bf16 %v168_v20, %v167_v19  ;;  %v289_v24 = vld [vmem:[#allocation8 + $0x38] sm:$0xff]  ;;  %v170_v26 = vld [vmem:[#allocation10 + $0x48] sm:$0xff]  ;;  %v290_v30 = vld [vmem:[#allocation8 + $0x40] sm:$0xff]  ;;  %v375_v2 = vsub.s32 %v372_v62, %v2746_v63  ;;  %vm577_vm8 = vcmask 64512  }
  0x98   :  { %v2712_v27 = vld [vmem:[#allocation2] sm:$0xff]  ;;  %v1974_v28 = vpack.c.bf16 %v289_v24, %v288_v23  ;;  %v1948_v29 = vpack.c.bf16 %v170_v26, %v169_v25  ;;  %v171_v32 = vld [vmem:[#allocation10 + $0x50] sm:$0xff]  ;;  %v172_v33 = vld [vmem:[#allocation10 + $0x58] sm:$0xff] }
  0x99   :  { %1815 = vmatprep.mubr.f32.mxu0 %v2712_v27  ;;  %v291_v31 = vld [vmem:[#allocation8 + $0x48] sm:$0xff]  ;;  %v1952_v35 = vpack.c.bf16 %v172_v33, %v171_v32  ;;  %v292_v36 = vld [vmem:[#allocation8 + $0x50] sm:$0xff]  ;;  %v293_v37 = vld [vmem:[#allocation8 + $0x58] sm:$0xff] }
  0x9a   :  { %1969 = vmatpush3.bf16.msra.mxu1 %v1968_v15  ;;  %1939 = vmatpush3.bf16.msra.mxu0 %v1936_v10  ;;  %v1977_v34 = vpack.c.bf16 %v291_v31, %v290_v30  ;;  %v173_v38 = vld [vmem:[#allocation10 + $0x60] sm:$0xff]  ;;  %v174_v39 = vld [vmem:[#allocation10 + $0x68] sm:$0xff]  ;;  %v1980_v40 = vpack.c.bf16 %v293_v37, %v292_v36  ;;  %v175_v44 = vld [vmem:[#allocation10 + $0x70] sm:$0xff] }
  0x9b   :  { %1970 = vmatprep.subr.bf16.mxu1 %v2516_v0  ;;  %1941 = vmatprep.subr.bf16.mxu0 %v1940_v16  ;;  %v1956_v41 = vpack.c.bf16 %v174_v39, %v173_v38  ;;  %v294_v42 = vld [vmem:[#allocation8 + $0x60] sm:$0xff]  ;;  %v295_v43 = vld [vmem:[#allocation8 + $0x68] sm:$0xff]  ;;  %v176_v45 = vld [vmem:[#allocation10 + $0x78] sm:$0xff] }
  0x9c   :  { %v1983_v46 = vpack.c.bf16 %v295_v43, %v294_v42  ;;  %v1960_v47 = vpack.c.bf16 %v176_v45, %v175_v44  ;;  %v296_v48 = vld [vmem:[#allocation8 + $0x70] sm:$0xff]  ;;  %v297_v49 = vld [vmem:[#allocation8 + $0x78] sm:$0xff]  ;;  %v158_v51 = vld [vmem:[#allocation5] sm:$0xff] }
  0x9d   :  { %v1986_v50 = vpack.c.bf16 %v297_v49, %v296_v48  ;;  %v2720_v52 = vld [vmem:[#allocation2 + $0x8] sm:$0xff]  ;;  %v2722_v53 = vld [vmem:[#allocation2 + $0x10] sm:$0xff]  ;;  %v2727_v54 = vld [vmem:[#allocation2 + $0x18] sm:$0xff] }
  0x9e   :  { %1972 = vmatpush3.bf16.msra.mxu1 %v1971_v21  ;;  %1943 = vmatpush3.bf16.msra.mxu0 %v1940_v16  ;;  %v2731_v55 = vld [vmem:[#allocation2 + $0x20] sm:$0xff]  ;;  %v2735_v56 = vld [vmem:[#allocation2 + $0x28] sm:$0xff]  ;;  %v2737_v57 = vld [vmem:[#allocation2 + $0x30] sm:$0xff] }
  0x9f   :  { %1973 = vmatprep.subr.bf16.mxu1 %v2516_v0  ;;  %1945 = vmatprep.subr.bf16.mxu0 %v1944_v22  ;;  %v2741_v58 = vld [vmem:[#allocation2 + $0x38] sm:$0xff]  ;;  %v1651_v19 = vld [vmem:[%s2943_s5] ss:$0 sm:$0xff] }
  0xa0   :  { %v1652_v59 = vld [vmem:[%s2944_s6] ss:$0 sm:$0xff] }
  0xa2   :  { %1975 = vmatpush3.bf16.msra.mxu1 %v1974_v28  ;;  %1947 = vmatpush3.bf16.msra.mxu0 %v1944_v22 }
  0xa3   :  { %1976 = vmatprep.subr.bf16.mxu1 %v2516_v0  ;;  %1949 = vmatprep.subr.bf16.mxu0 %v1948_v29 }
  0xa6   :  { %1978 = vmatpush3.bf16.msra.mxu1 %v1977_v34  ;;  %1951 = vmatpush3.bf16.msra.mxu0 %v1948_v29 }
  0xa7   :  { %1979 = vmatprep.subr.bf16.mxu1 %v2516_v0  ;;  %1953 = vmatprep.subr.bf16.mxu0 %v1952_v35 }
  0xaa   :  { %1981 = vmatpush3.bf16.msra.mxu1 %v1980_v40  ;;  %1955 = vmatpush3.bf16.msra.mxu0 %v1952_v35 }
  0xab   :  { %1982 = vmatprep.subr.bf16.mxu1 %v2516_v0  ;;  %1957 = vmatprep.subr.bf16.mxu0 %v1956_v41 }
  0xae   :  { %1984 = vmatpush3.bf16.msra.mxu1 %v1983_v46  ;;  %1959 = vmatpush3.bf16.msra.mxu0 %v1956_v41 }
  0xaf   :  { %1985 = vmatprep.subr.bf16.mxu1 %v2516_v0  ;;  %1961 = vmatprep.subr.bf16.mxu0 %v1960_v47 }
  0xb2   :  { %1987 = vmatpush3.bf16.msra.mxu1 %v1986_v50  ;;  %1963 = vmatpush3.bf16.msra.mxu0 %v1960_v47 }
  0xb3   :  { %2020 = vmatprep.subr.bf16.mxu1 %v2516_v0 }
  0xb5   :  { %1860 = vmatmul.mubr.f32.vlgmr.msra.gmra.mrb[0].mxu1 %v158_v51  ;;  %1816 = vmatmul.mubr.f32.vlgmr.msra.gmra.mrb[0].mxu0 %v2720_v52 }
  0xb6   :  { %1818 = vmatprep.mubr.f32.mxu0 %v2722_v53  ;;  %1894 = vmatprep.mubr.msk.f32.mxu1 %vm2517_vm0, %v2518_v1 }
  0xb9   :  { %1819 = vmatmul.mubr.f32.gmra.mrb[2].mxu0 %v2727_v54 }
  0xba   :  { %1821 = vmatprep.mubr.f32.mxu0 %v2731_v55 }
  0xbd   :  { %1822 = vmatmul.mubr.f32.gmra.mrb[4].mxu0 %v2735_v56 }
  0xbe   :  { %1824 = vmatprep.mubr.f32.mxu0 %v2737_v57 }
  0xc1   :  { %1825 = vmatmul.mubr.f32.gmra.mrb[6].mxu0 %v2741_v58 }
  0xc2   :  { %1091 = vmatprep.mubr.f32.mxu0 %v2518_v1 }
 0x188   :  { %v364_v3 = vpop.f32.mrb[0].mxu1  ;;  %v1817_v4 = vpop.f32.mrb[0].mxu0 }
 0x189   :  { %v369_v5 = vcombine.high %v364_v3, %v364_v3  ;;  %v376_v6 = vrot.slane %v364_v3, %v375_v2  ;;  %v1861_v7 = vpop.f32.mrb[1].mxu1  ;;  %v243_v9 = vpop.f32.mrb[1].mxu0 }
 0x18b   :  { %v383_v10 = vrot.slane %v369_v5, %v375_v2  ;;  %v384_v11 = vcombine.high %v376_v6, %v376_v6  ;;  %v392_v12 = vrot.slane %v376_v6, %v375_v2 }
 0x18c   :  { %v1820_v13 = vpop.f32.mrb[2].mxu0 }
 0x18d   :  { %v385_v14 = vcombine.high %v383_v10, %v383_v10  ;;  %v406_v15 = vrot.slane %v384_v11, %v375_v2  ;;  %v421_v16 = vrot.slane %v392_v12, %v2750_v8  ;;  %v253_v17 = vpop.f32.mrb[3].mxu0  ;;  %v414_v18 = vcombine.high %v392_v12, %v392_v12 }
 0x18e   :  { %v399_v20 = vrot.slane %v383_v10, %v375_v2 }
 0x18f   :  { %v425_v21 = vrot.slane %v406_v15, %v2750_v8  ;;  %v458_v22 = vadd.f32 %v421_v16, %v243_v9  ;;  %v416_v23 = vcombine.high %v406_v15, %v406_v15  ;;  %v429_v24 = vrot.slane %v414_v18, %v2750_v8 }
 0x190   :  { %v1823_v25 = vpop.f32.mrb[4].mxu0  ;;  %v413_v26 = vrot.slane %v385_v14, %v375_v2  ;;  %v437_v28 = vrot.slane %v399_v20, %v2750_v8  ;;  %v415_v29 = vcombine.high %v399_v20, %v399_v20  ;;  %v529_v18 = vand.u32 127, %v373_v61 }
 0x191   :  { %v459_v30 = vadd.f32 %v1817_v4, %v425_v21  ;;  %v473_v31 = vadd.f32 %v1651_v19, %v458_v22  ;;  %v433_v32 = vrot.slane %v416_v23, %v2750_v8  ;;  %v460_v33 = vadd.f32 %v429_v24, %v253_v17  ;;  %v263_v34 = vpop.f32.mrb[5].mxu0 }
 0x192   :  { %v441_v35 = vrot.slane %v413_v26, %v2750_v8  ;;  %v462_v36 = vadd.f32 %v437_v28, %v263_v34  ;;  %v417_v37 = vcombine.high %v413_v26, %v413_v26  ;;  %v445_v44 = vrot.slane %v415_v29, %v2750_v8 }
 0x193   :  { %v474_v38 = vadd.f32 %v1651_v19, %v459_v30  ;;  %2225 = vtanh.f32 %v473_v31  ;;  %v461_v39 = vadd.f32 %v1820_v13, %v433_v32  ;;  %v475_v40 = vadd.f32 %v1651_v19, %v460_v33 }
 0x194   :  { %v463_v41 = vadd.f32 %v1823_v25, %v441_v35  ;;  %v1826_v42 = vpop.f32.mrb[6].mxu0  ;;  %v449_v43 = vrot.slane %v417_v37, %v2750_v8  ;;  %v477_v46 = vadd.f32 %v1651_v19, %v462_v36  ;;  %v2768_v20 = vsub.s32 %v529_v18, %v2746_v63 }
 0x195   :  { %2227 = vtanh.f32 %v474_v38  ;;  %v476_v45 = vadd.f32 %v1651_v19, %v461_v39  ;;  %v273_v47 = vpop.f32.mrb[7].mxu0 }
 0x196   :  { %2229 = vtanh.f32 %v475_v40  ;;  %v465_v48 = vadd.f32 %v1826_v42, %v449_v43  ;;  %v464_v49 = vadd.f32 %v445_v44, %v273_v47  ;;  %v478_v50 = vadd.f32 %v1651_v19, %v463_v41 }
 0x197   :  { %2231 = vtanh.f32 %v476_v45  ;;  %v2520_v44 = vmov 0   ;;  %v2787_v45 = vsub.s32 1, %v2746_v63  ;;  %v596_v47 = vsub.s32 3, %v2746_v63 }
 0x198   :  { %2233 = vtanh.f32 %v477_v46  ;;  %v479_v51 = vadd.f32 %v1651_v19, %v464_v49  ;;  %v480_v60 = vadd.f32 %v1651_v19, %v465_v48  ;;  %2224 = vset.pattern.permute.xlu0 %v2520_v44  ;;  %2223 = vset.pattern.permute.xlu1 %v2520_v44  ;;  %v2790_v46 = vsub.s32 2, %v2746_v63 }
 0x199   :  { %2235 = vtanh.f32 %v478_v50 }
 0x19a   :  { %2237 = vtanh.f32 %v479_v51 }
 0x19b   :  { %2239 = vtanh.f32 %v480_v60 }
 0x19d   :  { %v2226_v62 = vpop.eup %2225 }
 0x19e   :  { %v496_v2 = vmul.f32 %v2226_v62, %v1652_v59 }
 0x19f   :  { %v2228_v3 = vpop.eup %2227 }
 0x1a0   :  { %v2230_v4 = vpop.eup %2229  ;;  %504 = vadd.xlane.f32.xlu0 %v496_v2  ;;  %v497_v7 = vmul.f32 %v2228_v3, %v1652_v59 }
 0x1a1   :  { %v498_v5 = vmul.f32 %v2230_v4, %v1652_v59  ;;  %v2232_v6 = vpop.eup %2231 }
 0x1a2   :  { %v2234_v9 = vpop.eup %2233  ;;  %v499_v10 = vmul.f32 %v2232_v6, %v1652_v59  ;;  %v604_v6 = vsub.s32 5, %v2746_v63 }
 0x1a3   :  { %508 = vadd.xlane.f32.xlu1 %v498_v5  ;;  %v2236_v11 = vpop.eup %2235  ;;  %v500_v12 = vmul.f32 %v2234_v9, %v1652_v59 }
 0x1a4   :  { %506 = vadd.xlane.f32.xlu0 %v497_v7  ;;  %v2238_v13 = vpop.eup %2237  ;;  %v501_v14 = vmul.f32 %v2236_v11, %v1652_v59  ;;  %v608_v11 = vsub.s32 6, %v2746_v63 }
 0x1a5   :  { %v2240_v15 = vpop.eup %2239  ;;  %v502_v16 = vmul.f32 %v2238_v13, %v1652_v59 }
 0x1a6   :  { %v503_v17 = vmul.f32 %v2240_v15, %v1652_v59  ;;  %v600_v59 = vsub.s32 4, %v2746_v63  ;;  %v612_v15 = vsub.s32 7, %v2746_v63  ;;  %v982_v63 = vld [vmem:[#allocation13 + $0x98] sm:$0xff] }
 0x1a7   :  { %510 = vadd.xlane.f32.xlu1 %v499_v10 }
 0x1a8   :  { %512 = vadd.xlane.f32.xlu0 %v500_v12 }
 0x1ab   :  { %514 = vadd.xlane.f32.xlu1 %v501_v14 }
 0x1ac   :  { %516 = vadd.xlane.f32.xlu0 %v502_v16 }
 0x1af   :  { %518 = vadd.xlane.f32.xlu1 %v503_v17 }
 0x22d   :  { %v505_v19 = vpop.xlane.xlu0 %504 }
 0x22e   :  { %v533_v23 = vrot.slane %v505_v19, %v2768_v20 }
 0x230   :  { %v509_v21 = vpop.xlane.xlu1 %508 }
 0x231   :  { %v507_v22 = vpop.xlane.xlu0 %506  ;;  %v541_v25 = vrot.slane %v509_v21, %v2768_v20 }
 0x232   :  { %v537_v24 = vrot.slane %v507_v22, %v2768_v20 }
 0x234   :  { %v563_v26 = vsel %vm562_vm1, %v537_v24, %v533_v23  ;;  %v511_v28 = vpop.xlane.xlu1 %510 }
 0x235   :  { %v565_v61 = vsel %vm564_vm2, %v541_v25, %v563_v26  ;;  %v545_v29 = vrot.slane %v511_v28, %v2768_v20  ;;  %v513_v30 = vpop.xlane.xlu0 %512 }
 0x236   :  { %v549_v31 = vrot.slane %v513_v30, %v2768_v20 }
 0x237   :  { %v567_v32 = vsel %vm566_vm3, %v545_v29, %v565_v61 }
 0x238   :  { %v569_v33 = vsel %vm568_vm4, %v549_v31, %v567_v32  ;;  %v515_v34 = vpop.xlane.xlu1 %514 }
 0x239   :  { %v553_v35 = vrot.slane %v515_v34, %v2768_v20  ;;  %v517_v36 = vpop.xlane.xlu0 %516 }
 0x23a   :  { %v557_v37 = vrot.slane %v517_v36, %v2768_v20 }
 0x23b   :  { %v571_v38 = vsel %vm570_vm5, %v553_v35, %v569_v33 }
 0x23c   :  { %v519_v39 = vpop.xlane.xlu1 %518  ;;  %v573_v40 = vsel %vm572_vm6, %v557_v37, %v571_v38 }
 0x23d   :  { %v561_v41 = vrot.slane %v519_v39, %v2768_v20 }
 0x23f   :  { %v575_v42 = vsel %vm574_vm7, %v561_v41, %v573_v40 }
 0x240   :  { %v578_v43 = vsel %vm577_vm8, %v575_v42, -inf }
 0x241   :  { %579 = vmax.xlane.f32.xlu0 %v578_v43 }
 0x2ce   :  { %v580_v48 = vpop.xlane.xlu0 %579 }
 0x2cf   :  { %v585_v49 = vrot.slane %v580_v48, %v2750_v8  ;;  %v589_v50 = vrot.slane %v580_v48, %v2787_v45  ;;  %v593_v51 = vrot.slane %v580_v48, %v2790_v46  ;;  %v597_v60 = vrot.slane %v580_v48, %v596_v47 }
 0x2d0   :  { %v601_v7 = vrot.slane %v580_v48, %v600_v59  ;;  %v605_v12 = vrot.slane %v580_v48, %v604_v6  ;;  %v609_v16 = vrot.slane %v580_v48, %v608_v11 }
 0x2d1   :  { %v622_v62 = vsub.f32 %v505_v19, %v585_v49  ;;  %v623_v2 = vsub.f32 %v507_v22, %v589_v50  ;;  %v624_v3 = vsub.f32 %v509_v21, %v593_v51  ;;  %v625_v9 = vsub.f32 %v511_v28, %v597_v60 }
 0x2d2   :  { %v626_v13 = vsub.f32 %v513_v30, %v601_v7  ;;  %v627_v17 = vsub.f32 %v515_v34, %v605_v12  ;;  %v613_v22 = vrot.slane %v580_v48, %v612_v15  ;;  %v628_v23 = vsub.f32 %v517_v36, %v609_v16 }
 0x2d3   :  { %v630_v4 = vmul.f32 1.442695, %v622_v62  ;;  %v632_v5 = vmul.f32 1.442695, %v623_v2  ;;  %v634_v10 = vmul.f32 1.442695, %v624_v3 }
 0x2d4   :  { %v636_v14 = vmul.f32 1.442695, %v625_v9  ;;  %v638_v18 = vmul.f32 1.442695, %v626_v13  ;;  %v640_v24 = vmul.f32 1.442695, %v627_v17  ;;  %v629_v26 = vsub.f32 %v519_v39, %v613_v22 }
 0x2d5   :  { %2241 = vpow2.f32 %v630_v4  ;;  %v642_v28 = vmul.f32 1.442695, %v628_v23 }
 0x2d6   :  { %2243 = vpow2.f32 %v632_v5  ;;  %v644_v29 = vmul.f32 1.442695, %v629_v26 }
 0x2d7   :  { %2245 = vpow2.f32 %v634_v10 }
 0x2d8   :  { %2247 = vpow2.f32 %v636_v14 }
 0x2d9   :  { %2249 = vpow2.f32 %v638_v18 }
 0x2da   :  { %2251 = vpow2.f32 %v640_v24 }
 0x2db   :  { %2253 = vpow2.f32 %v642_v28 }
 0x2dc   :  { %2255 = vpow2.f32 %v644_v29  ;;  %v964_v29 = vld [vmem:[#allocation13 + $0x8] sm:$0xff] }
 0x2df   :  { %v2242_v19 = vpop.eup %2241 }
 0x2e0   :  { %v2244_v21 = vpop.eup %2243  ;;  %655 = vperm.xlu1 %2223, %v2242_v19  }
 0x2e1   :  { %658 = vperm.xlu0 %2224, %v2244_v21   ;;  %v2246_v25 = vpop.eup %2245 }
 0x2e2   :  { %v2248_v61 = vpop.eup %2247 }
 0x2e3   :  { %v2250_v30 = vpop.eup %2249 }
 0x2e4   :  { %661 = vperm.xlu1 %2223, %v2246_v25   ;;  %v2252_v31 = vpop.eup %2251 }
 0x2e5   :  { %v2810_v32 = vpop.eup %2253 }
 0x2e6   :  { %v2813_v33 = vpop.eup %2255 }
 0x2e8   :  { %664 = vperm.xlu1 %2223, %v2248_v61  }
 0x2ec   :  { %667 = vperm.xlu1 %2223, %v2250_v30  }
 0x2f0   :  { %670 = vperm.xlu1 %2223, %v2252_v31  }
 0x2f4   :  { %673 = vperm.xlu1 %2223, %v2810_v32  }
 0x2f8   :  { %676 = vperm.xlu1 %2223, %v2813_v33  }
 0x35f   :  { %v656_v34 = vpop.permute.xlu1 %655 }
 0x360   :  { %v659_v38 = vpop.permute.xlu0 %658  ;;  %v681_v41 = vrot.slane %v656_v34, %v2768_v20  ;;  %v967_v34 = vld [vmem:[#allocation13 + $0x20] sm:$0xff] }
 0x361   :  { %v685_v40 = vrot.slane %v659_v38, %v2768_v20  ;;  %v968_v38 = vld [vmem:[#allocation13 + $0x28] sm:$0xff] }
 0x363   :  { %v662_v35 = vpop.permute.xlu1 %661  ;;  %v710_v49 = vsel %vm562_vm1, %v685_v40, %v681_v41  ;;  %v969_v40 = vld [vmem:[#allocation13 + $0x30] sm:$0xff]  ;;  %v972_v41 = vld [vmem:[#allocation13 + $0x48] sm:$0xff] }
 0x364   :  { %v689_v42 = vrot.slane %v662_v35, %v2768_v20  ;;  %v963_v35 = vld [vmem:[#allocation13] sm:$0xff] }
 0x366   :  { %v711_v51 = vsel %vm564_vm2, %v689_v42, %v710_v49  ;;  %v971_v42 = vld [vmem:[#allocation13 + $0x40] sm:$0xff]  ;;  %v976_v49 = vld [vmem:[#allocation13 + $0x68] sm:$0xff] }
 0x367   :  { %v665_v36 = vpop.permute.xlu1 %664 }
 0x368   :  { %v693_v43 = vrot.slane %v665_v36, %v2768_v20  ;;  %v966_v36 = vld [vmem:[#allocation13 + $0x18] sm:$0xff] }
 0x36a   :  { %v712_v62 = vsel %vm566_vm3, %v693_v43, %v711_v51  ;;  %v1994_v43 = vpack.c.bf16 %v972_v41, %v969_v40  ;;  %v1004_v41 = vld [vmem:[#allocation13 + $0x148] sm:$0xff] }
 0x36b   :  { %v668_v37 = vpop.permute.xlu1 %667 }
 0x36c   :  { %v697_v44 = vrot.slane %v668_v37, %v2768_v20  ;;  %v965_v37 = vld [vmem:[#allocation13 + $0x10] sm:$0xff] }
 0x36e   :  { %v713_v2 = vsel %vm568_vm4, %v697_v44, %v712_v62  ;;  %v974_v44 = vld [vmem:[#allocation13 + $0x58] sm:$0xff] }
 0x36f   :  { %v671_v39 = vpop.permute.xlu1 %670  ;;  %v978_v62 = vld [vmem:[#allocation13 + $0x78] sm:$0xff] }
 0x370   :  { %v701_v50 = vrot.slane %v671_v39, %v2768_v20  ;;  %v973_v39 = vld [vmem:[#allocation13 + $0x50] sm:$0xff] }
 0x372   :  { %v714_v4 = vsel %vm570_vm5, %v701_v50, %v713_v2  ;;  %v979_v50 = vld [vmem:[#allocation13 + $0x80] sm:$0xff]  ;;  %v977_v2 = vld [vmem:[#allocation13 + $0x70] sm:$0xff] }
 0x373   :  { %v674_v48 = vpop.permute.xlu1 %673  ;;  %v1996_v51 = vpack.c.bf16 %v979_v50, %v976_v49  ;;  %v1007_v49 = vld [vmem:[#allocation13 + $0x160] sm:$0xff] }
 0x374   :  { %v705_v60 = vrot.slane %v674_v48, %v2768_v20  ;;  %v2024_v48 = vpack.c.bf16 %v974_v44, %v971_v42  ;;  %v1009_v44 = vld [vmem:[#allocation13 + $0x170] sm:$0xff] }
 0x376   :  { %v715_v7 = vsel %vm572_vm6, %v705_v60, %v714_v4  ;;  %v975_v60 = vld [vmem:[#allocation13 + $0x60] sm:$0xff]  ;;  %v980_v4 = vld [vmem:[#allocation13 + $0x88] sm:$0xff] }
 0x377   :  { %v677_v3 = vpop.permute.xlu1 %676 }
 0x378   :  { %v709_v5 = vrot.slane %v677_v3, %v2768_v20  ;;  %v1998_v3 = vpack.c.bf16 %v978_v62, %v975_v60  ;;  %v868_v60 = vld [vmem:[#allocation11 + $0x8] sm:$0xff]  ;;  %v871_v62 = vld [vmem:[#allocation11 + $0x20] sm:$0xff] }
 0x37a   :  { %v716_v9 = vsel %vm574_vm7, %v709_v5, %v715_v7  ;;  %v2027_v5 = vpack.c.bf16 %v980_v4, %v977_v2  ;;  %v917_v4 = vld [vmem:[#allocation11 + $0x190] sm:$0xff] }
 0x37b   :  { %v718_v10 = vsel %vm577_vm8, %v716_v9, 0.0  ;;  %v981_v9 = vld [vmem:[#allocation13 + $0x90] sm:$0xff] }
 0x37c   :  { %719 = vadd.xlane.f32.xlu1 %v718_v10  ;;  %v984_v10 = vld [vmem:[#allocation13 + $0xa8] sm:$0xff] }
 0x409   :  { %v720_v12 = vpop.xlane.xlu1 %719 }
 0x40a   :  { %2257 = vrcp.f32 %v720_v12  ;;  %v983_v12 = vld [vmem:[#allocation13 + $0xa0] sm:$0xff] }
 0x414   :  { %v2258_v13 = vpop.eup %2257 }
 0x415   :  { %v726_v14 = vrot.slane %v2258_v13, %v2750_v8  ;;  %v730_v17 = vrot.slane %v2258_v13, %v2787_v45  ;;  %v734_v22 = vrot.slane %v2258_v13, %v2790_v46  ;;  %v738_v23 = vrot.slane %v2258_v13, %v596_v47 }
 0x416   :  { %v742_v26 = vrot.slane %v2258_v13, %v600_v59  ;;  %v2021_v47 = vpack.c.bf16 %v968_v38, %v965_v37  ;;  %v750_v59 = vrot.slane %v2258_v13, %v608_v11  ;;  %v754_v11 = vrot.slane %v2258_v13, %v612_v15  ;;  %v985_v15 = vld [vmem:[#allocation13 + $0xb0] sm:$0xff] }
 0x417   :  { %v763_v16 = vmul.f32 %v2242_v19, %v726_v14  ;;  %v764_v18 = vmul.f32 %v2244_v21, %v730_v17  ;;  %v765_v20 = vmul.f32 %v2246_v25, %v734_v22  ;;  %v766_v24 = vmul.f32 %v2248_v61, %v738_v23  ;;  %v986_v14 = vld [vmem:[#allocation13 + $0xb8] sm:$0xff]  ;;  %v988_v17 = vld [vmem:[#allocation13 + $0xc8] sm:$0xff]  ;;  %v987_v22 = vld [vmem:[#allocation13 + $0xc0] sm:$0xff] }
 0x418   :  { %v767_v28 = vmul.f32 %v2250_v30, %v742_v26  ;;  %v746_v19 = vrot.slane %v2258_v13, %v604_v6  ;;  %v1988_v21 = vpack.c.bf16 %v967_v34, %v964_v29  ;;  %v1990_v25 = vpack.c.bf16 %v966_v36, %v963_v35  ;;  %v970_v30 = vld [vmem:[#allocation13 + $0x38] sm:$0xff]  ;;  %2022 = vmatpush3.bf16.msra.mxu1 %v2021_v47  ;;  %v989_v23 = vld [vmem:[#allocation13 + $0xd0] sm:$0xff]  ;;  %v992_v26 = vld [vmem:[#allocation13 + $0xe8] sm:$0xff] }
 0x419   :  { %773 = vperm.xlu0 %2224, %v763_v16   ;;  %v1992_v6 = vpack.c.bf16 %v973_v39, %v970_v30  ;;  %2023 = vmatprep.subr.bf16.mxu1 %v2516_v0  ;;  %v2000_v7 = vpack.c.bf16 %v985_v15, %v982_v63  ;;  %v2002_v13 = vpack.c.bf16 %v984_v10, %v981_v9  ;;  %v997_v29 = vld [vmem:[#allocation13 + $0x110] sm:$0xff]  ;;  %v996_v35 = vld [vmem:[#allocation13 + $0x108] sm:$0xff]  ;;  %v995_v36 = vld [vmem:[#allocation13 + $0x100] sm:$0xff] }
 0x41a   :  { %1989 = vmatprep.subr.bf16.mxu0 %v1988_v21  ;;  %v768_v61 = vmul.f32 %v2252_v31, %v746_v19  ;;  %v769_v31 = vmul.f32 %v2810_v32, %v750_v59  ;;  %v770_v32 = vmul.f32 %v2813_v33, %v754_v11  ;;  %v2030_v16 = vpack.c.bf16 %v986_v14, %v983_v12  ;;  %v994_v19 = vld [vmem:[#allocation13 + $0xf8] sm:$0xff]  ;;  %v993_v21 = vld [vmem:[#allocation13 + $0xf0] sm:$0xff]  ;;  %v1000_v47 = vld [vmem:[#allocation13 + $0x128] sm:$0xff] }
 0x41b   :  { %1991 = vmatpush1.bf16.msra.mxu0 %v1990_v25  ;;  %v2008_v34 = vpack.c.bf16 %v997_v29, %v994_v19  ;;  %v2010_v37 = vpack.c.bf16 %v996_v35, %v993_v21  ;;  %v998_v25 = vld [vmem:[#allocation13 + $0x118] sm:$0xff]  ;;  %v999_v30 = vld [vmem:[#allocation13 + $0x120] sm:$0xff]  ;;  %v1008_v11 = vld [vmem:[#allocation13 + $0x168] sm:$0xff] }
 0x41c   :  { %1993 = vmatprep.subr.bf16.mxu0 %v1992_v6  ;;  %2025 = vmatpush3.bf16.msra.mxu1 %v2024_v48  ;;  %v2036_v38 = vpack.c.bf16 %v998_v25, %v995_v36  ;;  %v1002_v39 = vld [vmem:[#allocation13 + $0x138] sm:$0xff]  ;;  %v1001_v6 = vld [vmem:[#allocation13 + $0x130] sm:$0xff] }
 0x41d   :  { %778 = vperm.xlu0 %2224, %v764_v18   ;;  %2026 = vmatprep.subr.bf16.mxu1 %v2516_v0  ;;  %v991_v18 = vld [vmem:[#allocation13 + $0xe0] sm:$0xff]  ;;  %v2014_v40 = vpack.c.bf16 %v1002_v39, %v999_v30  ;;  %v2039_v42 = vpack.c.bf16 %v1004_v41, %v1001_v6  ;;  %v2854_v63 = vld [vmem:[#allocation7 + $0x8] sm:$0xff]  ;;  %v2856_v15 = vld [vmem:[#allocation7] sm:$0xff] }
 0x41e   :  { %v2004_v33 = vpack.c.bf16 %v991_v18, %v988_v17 }
 0x41f   :  { %1995 = vmatpush1.bf16.msra.mxu0 %v1994_v43  ;;  %v1006_v43 = vld [vmem:[#allocation13 + $0x158] sm:$0xff] }
 0x420   :  { %1997 = vmatprep.subr.bf16.mxu0 %v1996_v51  ;;  %2028 = vmatpush3.bf16.msra.mxu1 %v2027_v5  ;;  %v2016_v48 = vpack.c.bf16 %v1009_v44, %v1006_v43  ;;  %v1010_v51 = vld [vmem:[#allocation13 + $0x178] sm:$0xff]  ;;  %v920_v5 = vld [vmem:[#allocation11 + $0x1a8] sm:$0xff] }
 0x421   :  { %783 = vperm.xlu0 %2224, %v765_v20   ;;  %2029 = vmatprep.subr.bf16.mxu1 %v2516_v0  ;;  %v990_v20 = vld [vmem:[#allocation13 + $0xd8] sm:$0xff]  ;;  %v2042_v2 = vpack.c.bf16 %v1010_v51, %v1007_v49 }
 0x423   :  { %1999 = vmatpush1.bf16.msra.mxu0 %v1998_v3  ;;  %v2044_v3 = vpack.c.bf16 %v871_v62, %v868_v60 }
 0x424   :  { %2001 = vmatprep.subr.bf16.mxu0 %v2000_v7  ;;  %2031 = vmatpush3.bf16.msra.mxu1 %v2030_v16  ;;  %v1664_v7 = vpack.c.bf16 %v2854_v63, %v2856_v15 }
 0x425   :  { %788 = vperm.xlu0 %2224, %v766_v24   ;;  %2032 = vmatprep.subr.bf16.mxu1 %v2516_v0  ;;  %v2006_v24 = vpack.c.bf16 %v990_v20, %v987_v22 }
 0x426   :  { %1565 = vst [vmem:[#allocation16] sm:$0xff] %v1664_v7 }
 0x427   :  { %2003 = vmatpush1.bf16.msra.mxu0 %v2002_v13 }
 0x428   :  { %2005 = vmatprep.subr.bf16.mxu0 %v2004_v33 }
 0x429   :  { %793 = vperm.xlu0 %2224, %v767_v28   ;;  %v2033_v28 = vpack.c.bf16 %v992_v26, %v989_v23 }
 0x42b   :  { %2007 = vmatpush1.bf16.msra.mxu0 %v2006_v24  ;;  %2034 = vmatpush3.bf16.msra.mxu1 %v2033_v28 }
 0x42c   :  { %2035 = vmatprep.subr.bf16.mxu1 %v2516_v0  ;;  %2009 = vmatprep.subr.bf16.mxu0 %v2008_v34 }
 0x42d   :  { %798 = vperm.xlu0 %2224, %v768_v61   ;;  %v1003_v61 = vld [vmem:[#allocation13 + $0x140] sm:$0xff] }
 0x42e   :  { %v2012_v59 = vpack.c.bf16 %v1003_v61, %v1000_v47 }
 0x42f   :  { %2011 = vmatpush1.bf16.msra.mxu0 %v2010_v37  ;;  %2037 = vmatpush3.bf16.msra.mxu1 %v2036_v38 }
 0x430   :  { %2038 = vmatprep.subr.bf16.mxu1 %v2516_v0  ;;  %2013 = vmatprep.subr.bf16.mxu0 %v2012_v59 }
 0x431   :  { %803 = vperm.xlu0 %2224, %v769_v31   ;;  %v1005_v31 = vld [vmem:[#allocation13 + $0x150] sm:$0xff] }
 0x432   :  { %v2018_v50 = vpack.c.bf16 %v1008_v11, %v1005_v31 }
 0x433   :  { %2015 = vmatpush1.bf16.msra.mxu0 %v2014_v40  ;;  %2040 = vmatpush3.bf16.msra.mxu1 %v2039_v42 }
 0x434   :  { %2041 = vmatprep.subr.bf16.mxu1 %v2516_v0  ;;  %2017 = vmatprep.subr.bf16.mxu0 %v2016_v48 }
 0x435   :  { %808 = vperm.xlu0 %2224, %v770_v32   ;;  %v2108_v32 = vpack.c.bf16 %v920_v5, %v917_v4 }
 0x437   :  { %2019 = vmatpush1.bf16.msra.mxu0 %v2018_v50  ;;  %2043 = vmatpush3.bf16.msra.mxu1 %v2042_v2 }
 0x438   :  { %2045 = vmatprep.subr.bf16.mxu0 %v2044_v3  ;;  %2109 = vmatprep.subr.bf16.mxu1 %v2108_v32 }
 0x498   :  { %v774_v9 = vpop.permute.xlu0 %773 }
 0x499   :  { %v811_v13 = vmul.f32 %v774_v9, %v2712_v27 }
 0x49b   :  { %v819_v18 = vrot.slane %v811_v13, 4 }
 0x49c   :  { %v779_v10 = vpop.permute.xlu0 %778 }
 0x49d   :  { %v812_v12 = vmul.f32 %v779_v10, %v2720_v52  ;;  %v820_v24 = vadd.f32 %v819_v18, %v811_v13 }
 0x49f   :  { %v825_v16 = vrot.slane %v812_v12, 4  ;;  %v821_v21 = vrot.slane %v820_v24, 2 }
 0x4a0   :  { %v784_v14 = vpop.permute.xlu0 %783 }
 0x4a1   :  { %v813_v17 = vmul.f32 %v784_v14, %v2722_v53  ;;  %v826_v20 = vadd.f32 %v825_v16, %v812_v12  ;;  %v822_v38 = vadd.f32 %v821_v21, %v820_v24  ;;  %v877_v21 = vld [vmem:[#allocation11 + $0x50] sm:$0xff] }
 0x4a3   :  { %v831_v33 = vrot.slane %v813_v17, 4  ;;  %v827_v29 = vrot.slane %v826_v20, 2  ;;  %v823_v41 = vrot.slane %v822_v38, 1 }
 0x4a4   :  { %v789_v22 = vpop.permute.xlu0 %788 }
 0x4a5   :  { %v814_v23 = vmul.f32 %v789_v22, %v2727_v54  ;;  %v832_v26 = vadd.f32 %v831_v33, %v813_v17  ;;  %v828_v53 = vadd.f32 %v827_v29, %v826_v20  ;;  %v824_v60 = vadd.f32 %v823_v41, %v822_v38  ;;  %v867_v33 = vld [vmem:[#allocation11] sm:$0xff]  ;;  %v870_v22 = vld [vmem:[#allocation11 + $0x18] sm:$0xff]  ;;  %v872_v29 = vld [vmem:[#allocation11 + $0x28] sm:$0xff] }
 0x4a7   :  { %v837_v28 = vrot.slane %v814_v23, 4  ;;  %v833_v52 = vrot.slane %v832_v26, 2  ;;  %v829_v6 = vrot.slane %v828_v53, 1  ;;  %v1665_v12 = vpack.c.bf16 %v824_v60, %v824_v60 }
 0x4a8   :  { %v794_v19 = vpop.permute.xlu0 %793 }
 0x4a9   :  { %v838_v34 = vadd.f32 %v837_v28, %v814_v23  ;;  %v815_v27 = vmul.f32 %v794_v19, %v2731_v55  ;;  %v834_v47 = vadd.f32 %v833_v52, %v832_v26  ;;  %v869_v23 = vld [vmem:[#allocation11 + $0x10] sm:$0xff]  ;;  %v1598_v52 = vunpack.c.l.b16 %v1665_v12 }
 0x4ab   :  { %v839_v35 = vrot.slane %v838_v34, 2  ;;  %v843_v36 = vrot.slane %v815_v27, 4  ;;  %v835_v42 = vrot.slane %v834_v47, 1 }
 0x4ac   :  { %v799_v37 = vpop.permute.xlu0 %798 }
 0x4ad   :  { %v816_v25 = vmul.f32 %v799_v37, %v2735_v56  ;;  %v844_v61 = vadd.f32 %v843_v36, %v815_v27  ;;  %v840_v54 = vadd.f32 %v839_v35, %v838_v34  ;;  %v830_v56 = vadd.f32 %v829_v6, %v828_v53  ;;  %v874_v34 = vld [vmem:[#allocation11 + $0x38] sm:$0xff] }
 0x4ae   :  { %v836_v62 = vadd.f32 %v835_v42, %v834_v47  ;;  %v2046_v36 = vpack.c.bf16 %v870_v22, %v867_v33  ;;  %v923_v47 = vld [vmem:[#allocation11 + $0x1c0] sm:$0xff]  ;;  %v889_v22 = vld [vmem:[#allocation11 + $0xb0] sm:$0xff] }
 0x4af   :  { %v845_v59 = vrot.slane %v844_v61, 2  ;;  %v849_v30 = vrot.slane %v816_v25, 4  ;;  %v841_v44 = vrot.slane %v840_v54, 1  ;;  %v1666_v7 = vpack.c.bf16 %v830_v56, %v830_v56 }
 0x4b0   :  { %v804_v39 = vpop.permute.xlu0 %803  ;;  %v1667_v13 = vpack.c.bf16 %v836_v62, %v836_v62 }
 0x4b1   :  { %v817_v40 = vmul.f32 %v804_v39, %v2737_v57  ;;  %v846_v43 = vadd.f32 %v845_v59, %v844_v61  ;;  %v850_v55 = vadd.f32 %v849_v30, %v816_v25  ;;  %v842_v3 = vadd.f32 %v841_v44, %v840_v54  ;;  %v926_v61 = vld [vmem:[#allocation11 + $0x1d8] sm:$0xff] }
 0x4b2   :  { %v1599_v24 = vunpack.c.l.b16 %v1666_v7  ;;  %v1600_v35 = vunpack.c.l.b16 %v1667_v13  ;;  %v2110_v30 = vpack.c.bf16 %v872_v29, %v869_v23  ;;  %v2048_v39 = vpack.c.bf16 %v877_v21, %v874_v34  ;;  %v888_v29 = vld [vmem:[#allocation11 + $0xa8] sm:$0xff] }
 0x4b3   :  { %v855_v48 = vrot.slane %v817_v40, 4  ;;  %v847_v31 = vrot.slane %v846_v43, 1  ;;  %v851_v11 = vrot.slane %v850_v55, 2  ;;  %v1668_v16 = vpack.c.bf16 %v842_v3, %v842_v3 }
 0x4b4   :  { %v809_v49 = vpop.permute.xlu0 %808  ;;  %v1606_v6 = vsel %vm562_vm1, %v1599_v24, %v1598_v52  ;;  %v887_v52 = vld [vmem:[#allocation11 + $0xa0] sm:$0xff] }
 0x4b5   :  { %v856_v50 = vadd.f32 %v855_v48, %v817_v40  ;;  %v818_v51 = vmul.f32 %v809_v49, %v2741_v58  ;;  %v852_v2 = vadd.f32 %v851_v11, %v850_v55  ;;  %v848_v57 = vadd.f32 %v847_v31, %v846_v43  ;;  %v873_v43 = vld [vmem:[#allocation11 + $0x30] sm:$0xff]  ;;  %v876_v55 = vld [vmem:[#allocation11 + $0x48] sm:$0xff]  ;;  %v875_v49 = vld [vmem:[#allocation11 + $0x40] sm:$0xff] }
 0x4b6   :  { %v1019_v58 = vsel %vm562_vm1, %v830_v56, %v824_v60  ;;  %v1601_v53 = vunpack.c.l.b16 %v1668_v16  ;;  %v1607_v44 = vsel %vm564_vm2, %v1600_v35, %v1606_v6  ;;  %v2112_v11 = vpack.c.bf16 %v926_v61, %v923_v47  ;;  %v878_v56 = vld [vmem:[#allocation11 + $0x58] sm:$0xff]  ;;  %v881_v16 = vld [vmem:[#allocation11 + $0x70] sm:$0xff]  ;;  %v892_v35 = vld [vmem:[#allocation11 + $0xc8] sm:$0xff] }
 0x4b7   :  { %v857_v4 = vrot.slane %v856_v50, 2  ;;  %v861_v5 = vrot.slane %v818_v51, 4  ;;  %v853_v32 = vrot.slane %v852_v2, 1  ;;  %v1669_v20 = vpack.c.bf16 %v848_v57, %v848_v57  ;;  %v894_v47 = vld [vmem:[#allocation11 + $0xd8] sm:$0xff]  ;;  %v901_v6 = vld [vmem:[#allocation11 + $0x110] sm:$0xff] }
 0x4b8   :  { %v1020_v27 = vsel %vm564_vm2, %v836_v62, %v1019_v58  ;;  %v2114_v7 = vpack.c.bf16 %v878_v56, %v875_v49  ;;  %v935_v58 = vld [vmem:[#allocation11 + $0x220] sm:$0xff]  ;;  %v902_v49 = vld [vmem:[#allocation11 + $0x118] sm:$0xff]  ;;  %v904_v56 = vld [vmem:[#allocation11 + $0x128] sm:$0xff] }
 0x4b9   :  { %v858_v9 = vadd.f32 %v857_v4, %v856_v50  ;;  %v862_v10 = vadd.f32 %v861_v5, %v818_v51  ;;  %v854_v14 = vadd.f32 %v853_v32, %v852_v2  ;;  %v1021_v37 = vsel %vm566_vm3, %v842_v3, %v1020_v27  ;;  %v880_v50 = vld [vmem:[#allocation11 + $0x68] sm:$0xff]  ;;  %v883_v2 = vld [vmem:[#allocation11 + $0x80] sm:$0xff]  ;;  %v929_v3 = vld [vmem:[#allocation11 + $0x1f0] sm:$0xff] }
 0x4ba   :  { %v1022_v54 = vsel %vm568_vm4, %v848_v57, %v1021_v37  ;;  %v1602_v59 = vunpack.c.l.b16 %v1669_v20  ;;  %v1608_v51 = vsel %vm566_vm3, %v1601_v53, %v1607_v44  ;;  %v932_v4 = vld [vmem:[#allocation11 + $0x208] sm:$0xff]  ;;  %v2050_v32 = vpack.c.bf16 %v876_v55, %v873_v43  ;;  %v938_v20 = vld [vmem:[#allocation11 + $0x238] sm:$0xff]  ;;  %v941_v37 = vld [vmem:[#allocation11 + $0x250] sm:$0xff] }
 0x4bb   :  { %v859_v17 = vrot.slane %v858_v9, 1  ;;  %v863_v18 = vrot.slane %v862_v10, 2  ;;  %v1670_v26 = vpack.c.bf16 %v854_v14, %v854_v14  ;;  %v1023_v42 = vsel %vm570_vm5, %v854_v14, %v1022_v54  ;;  %v890_v27 = vld [vmem:[#allocation11 + $0xb8] sm:$0xff]  ;;  %v897_v55 = vld [vmem:[#allocation11 + $0xf0] sm:$0xff]  ;;  %v900_v44 = vld [vmem:[#allocation11 + $0x108] sm:$0xff] }
 0x4bc   :  { %v1609_v5 = vsel %vm568_vm4, %v1602_v59, %v1608_v51  ;;  %v2052_v13 = vpack.c.bf16 %v883_v2, %v880_v50  ;;  %v2116_v14 = vpack.c.bf16 %v932_v4, %v929_v3  ;;  %v2120_v21 = vpack.c.bf16 %v938_v20, %v935_v58  ;;  %v893_v59 = vld [vmem:[#allocation11 + $0xd0] sm:$0xff]  ;;  %v907_v50 = vld [vmem:[#allocation11 + $0x140] sm:$0xff]  ;;  %v906_v4 = vld [vmem:[#allocation11 + $0x138] sm:$0xff] }
 0x4bd   :  { %v860_v28 = vadd.f32 %v859_v17, %v858_v9  ;;  %v864_v19 = vadd.f32 %v863_v18, %v862_v10  ;;  %v1603_v40 = vunpack.c.l.b16 %v1670_v26  ;;  %v879_v9 = vld [vmem:[#allocation11 + $0x60] sm:$0xff]  ;;  %v882_v10 = vld [vmem:[#allocation11 + $0x78] sm:$0xff]  ;;  %v884_v17 = vld [vmem:[#allocation11 + $0x88] sm:$0xff] }
 0x4be   :  { %v886_v18 = vld [vmem:[#allocation11 + $0x98] sm:$0xff]  ;;  %v2054_v26 = vpack.c.bf16 %v882_v10, %v879_v9  ;;  %v953_v51 = vld [vmem:[#allocation11 + $0x2b0] sm:$0xff]  ;;  %v903_v3 = vld [vmem:[#allocation11 + $0x120] sm:$0xff] }
 0x4bf   :  { %v1671_v25 = vpack.c.bf16 %v860_v28, %v860_v28  ;;  %v865_v38 = vrot.slane %v864_v19, 1  ;;  %v1024_v31 = vsel %vm572_vm6, %v860_v28, %v1023_v42  ;;  %v1610_v12 = vsel %vm570_vm5, %v1603_v40, %v1609_v5  ;;  %v947_v40 = vld [vmem:[#allocation11 + $0x280] sm:$0xff]  ;;  %v910_v9 = vld [vmem:[#allocation11 + $0x158] sm:$0xff]  ;;  %v913_v10 = vld [vmem:[#allocation11 + $0x170] sm:$0xff] }
 0x4c0   :  { %v2118_v28 = vpack.c.bf16 %v884_v17, %v881_v16  ;;  %v2056_v34 = vpack.c.bf16 %v889_v22, %v886_v18  ;;  %v2068_v5 = vpack.c.bf16 %v907_v50, %v904_v56  ;;  %v909_v17 = vld [vmem:[#allocation11 + $0x150] sm:$0xff]  ;;  %v2072_v18 = vpack.c.bf16 %v913_v10, %v910_v9  ;;  %v912_v22 = vld [vmem:[#allocation11 + $0x168] sm:$0xff]  ;;  %v911_v58 = vld [vmem:[#allocation11 + $0x160] sm:$0xff] }
 0x4c1   :  { %v866_v41 = vadd.f32 %v865_v38, %v864_v19  ;;  %v1604_v48 = vunpack.c.l.b16 %v1671_v25  ;;  %v885_v19 = vld [vmem:[#allocation11 + $0x90] sm:$0xff]  ;;  %v2122_v25 = vpack.c.bf16 %v890_v27, %v887_v52  ;;  %v891_v38 = vld [vmem:[#allocation11 + $0xc0] sm:$0xff]  ;;  %v914_v20 = vld [vmem:[#allocation11 + $0x178] sm:$0xff] }
 0x4c2   :  { %v2058_v53 = vpack.c.bf16 %v888_v29, %v885_v19  ;;  %v2062_v42 = vpack.c.bf16 %v894_v47, %v891_v38  ;;  %v915_v19 = vld [vmem:[#allocation11 + $0x180] sm:$0xff]  ;;  %v1334_v52 = vld [vmem:[#allocation14 + $0x28] sm:$0xff]  ;;  %v922_v27 = vld [vmem:[#allocation11 + $0x1b8] sm:$0xff] }
 0x4c3   :  { %v1672_v60 = vpack.c.bf16 %v866_v41, %v866_v41  ;;  %v1025_v62 = vsel %vm574_vm7, %v866_v41, %v1024_v31  ;;  %v1611_v33 = vsel %vm572_vm6, %v1604_v48, %v1610_v12  ;;  %v950_v41 = vld [vmem:[#allocation11 + $0x298] sm:$0xff]  ;;  %v959_v12 = vld [vmem:[#allocation11 + $0x2e0] sm:$0xff]  ;;  %v949_v9 = vld [vmem:[#allocation11 + $0x290] sm:$0xff] }
 0x4c4   :  { %1092 = vmatmul.mubr.f32.vlgmr.msra.gmra.mrb[8].mxu0 %v1025_v62  ;;  %1895 = vmatmul.mubr.f32.vlgmr.msra.gmra.mrb[2].mxu1 %v1025_v62  ;;  %v2128_v31 = vpack.c.bf16 %v950_v41, %v947_v40  ;;  %v2066_v62 = vpack.c.bf16 %v900_v44, %v897_v55  ;;  %v1337_v38 = vld [vmem:[#allocation14 + $0x40] sm:$0xff]  ;;  %v1340_v47 = vld [vmem:[#allocation14 + $0x58] sm:$0xff]  ;;  %v1343_v41 = vld [vmem:[#allocation14 + $0x70] sm:$0xff] }
 0x4c5   :  { %v1605_v57 = vunpack.c.l.b16 %v1672_v60  ;;  %2047 = vmatpush1.bf16.msra.mxu0 %v2046_v36  ;;  %2111 = vmatpush3.bf16.msra.mxu1 %v2110_v30  ;;  %v895_v36 = vld [vmem:[#allocation11 + $0xe0] sm:$0xff]  ;;  %v896_v30 = vld [vmem:[#allocation11 + $0xe8] sm:$0xff]  ;;  %v930_v40 = vld [vmem:[#allocation11 + $0x1f8] sm:$0xff] }
 0x4c6   :  { %2049 = vmatprep.subr.bf16.mxu0 %v2048_v39  ;;  %2113 = vmatprep.subr.bf16.mxu1 %v2112_v11  ;;  %v2060_v61 = vpack.c.bf16 %v895_v36, %v892_v35  ;;  %v898_v39 = vld [vmem:[#allocation11 + $0xf8] sm:$0xff]  ;;  %v2126_v43 = vpack.c.bf16 %v896_v30, %v893_v59  ;;  %v899_v11 = vld [vmem:[#allocation11 + $0x100] sm:$0xff]  ;;  %v956_v60 = vld [vmem:[#allocation11 + $0x2c8] sm:$0xff] }
 0x4c7   :  { %1303 = vmatprep.mubr.f32.mxu1 %v2854_v63  ;;  %1232 = vmatprep.mubr.f32.mxu0 %v2854_v63  ;;  %v1612_v23 = vsel %vm574_vm7, %v1605_v57, %v1611_v33  ;;  %v944_v63 = vld [vmem:[#allocation11 + $0x268] sm:$0xff]  ;;  %v2064_v48 = vpack.c.bf16 %v901_v6, %v898_v39  ;;  %v2130_v2 = vpack.c.bf16 %v902_v49, %v899_v11  ;;  %v925_v35 = vld [vmem:[#allocation11 + $0x1d0] sm:$0xff]  ;;  %v927_v30 = vld [vmem:[#allocation11 + $0x1e0] sm:$0xff] }
 0x4c8   :  { %v1613_v24 = vpack.c.b16 %v1612_v23, %v1612_v23  ;;  %v2124_v54 = vpack.c.bf16 %v944_v63, %v941_v37  ;;  %v2132_v57 = vpack.c.bf16 %v956_v60, %v953_v51  ;;  %v916_v23 = vld [vmem:[#allocation11 + $0x188] sm:$0xff]  ;;  %v921_v37 = vld [vmem:[#allocation11 + $0x1b0] sm:$0xff]  ;;  %v2176_v39 = vpack.c.bf16 %v1340_v47, %v1337_v38  ;;  %v1349_v56 = vld [vmem:[#allocation14 + $0xa0] sm:$0xff] }
 0x4c9   :  { %2051 = vmatpush1.bf16.msra.mxu0 %v2050_v32  ;;  %2115 = vmatpush3.bf16.msra.mxu1 %v2114_v7  ;;  %v905_v32 = vld [vmem:[#allocation11 + $0x130] sm:$0xff]  ;;  %v908_v7 = vld [vmem:[#allocation11 + $0x148] sm:$0xff]  ;;  %v2086_v44 = vpack.c.bf16 %v930_v40, %v927_v30  ;;  %v1352_v50 = vld [vmem:[#allocation14 + $0xb8] sm:$0xff] }
 0x4ca   :  { %2053 = vmatprep.subr.bf16.mxu0 %v2052_v13  ;;  %2117 = vmatprep.subr.bf16.mxu1 %v2116_v14  ;;  %1615 = vst [vmem:[#allocation16 + $0x8] sm:$0xf] %v1613_v24  ;;  %v962_v13 = vld [vmem:[#allocation11 + $0x2f8] sm:$0xff]  ;;  %v2070_v14 = vpack.c.bf16 %v906_v4, %v903_v3  ;;  %v2134_v16 = vpack.c.bf16 %v908_v7, %v905_v32  ;;  %v919_v24 = vld [vmem:[#allocation11 + $0x1a0] sm:$0xff]  ;;  %v937_v55 = vld [vmem:[#allocation11 + $0x230] sm:$0xff] }
 0x4cb   :  { %v2136_v33 = vpack.c.bf16 %v962_v13, %v959_v12  ;;  %v2076_v29 = vpack.c.bf16 %v919_v24, %v916_v23  ;;  %v936_v49 = vld [vmem:[#allocation11 + $0x228] sm:$0xff]  ;;  %v943_v60 = vld [vmem:[#allocation11 + $0x260] sm:$0xff]  ;;  %v2182_v3 = vpack.c.bf16 %v1352_v50, %v1349_v56  ;;  %v946_v7 = vld [vmem:[#allocation11 + $0x278] sm:$0xff] }
 0x4cc   :  { %v940_v51 = vld [vmem:[#allocation11 + $0x248] sm:$0xff]  ;;  %v945_v12 = vld [vmem:[#allocation11 + $0x270] sm:$0xff]  ;;  %v1336_v30 = vld [vmem:[#allocation14 + $0x38] sm:$0xff] }
 0x4cd   :  { %2055 = vmatpush1.bf16.msra.mxu0 %v2054_v26  ;;  %2119 = vmatpush3.bf16.msra.mxu1 %v2118_v28  ;;  %v2074_v26 = vpack.c.bf16 %v912_v22, %v909_v17  ;;  %v2138_v28 = vpack.c.bf16 %v914_v20, %v911_v58  ;;  %v2092_v4 = vpack.c.bf16 %v943_v60, %v940_v51  ;;  %v1358_v32 = vld [vmem:[#allocation14 + $0xe8] sm:$0xff]  ;;  %v1361_v17 = vld [vmem:[#allocation14 + $0x100] sm:$0xff]  ;;  %v1351_v56 = vld [vmem:[#allocation14 + $0xb0] sm:$0xff] }
 0x4ce   :  { %2057 = vmatprep.subr.bf16.mxu0 %v2056_v34  ;;  %2121 = vmatprep.subr.bf16.mxu1 %v2120_v21  ;;  %v918_v34 = vld [vmem:[#allocation11 + $0x198] sm:$0xff]  ;;  %v1331_v21 = vld [vmem:[#allocation14 + $0x10] sm:$0xff]  ;;  %v955_v22 = vld [vmem:[#allocation11 + $0x2c0] sm:$0xff] }
 0x4cf   :  { %v2078_v36 = vpack.c.bf16 %v918_v34, %v915_v19  ;;  %v2173_v63 = vpack.c.bf16 %v1334_v52, %v1331_v21  ;;  %v951_v20 = vld [vmem:[#allocation11 + $0x2a0] sm:$0xff]  ;;  %v1370_v19 = vld [vmem:[#allocation14 + $0x148] sm:$0xff]  ;;  %v961_v34 = vld [vmem:[#allocation11 + $0x2f0] sm:$0xff] }
 0x4d0   :  { %v957_v52 = vld [vmem:[#allocation11 + $0x2d0] sm:$0xff] }
 0x4d1   :  { %2059 = vmatpush1.bf16.msra.mxu0 %v2058_v53  ;;  %2123 = vmatpush3.bf16.msra.mxu1 %v2122_v25  ;;  %v2080_v53 = vpack.c.bf16 %v925_v35, %v922_v27  ;;  %v924_v25 = vld [vmem:[#allocation11 + $0x1c8] sm:$0xff]  ;;  %v1347_v60 = vld [vmem:[#allocation14 + $0x90] sm:$0xff] }
 0x4d2   :  { %2061 = vmatprep.subr.bf16.mxu0 %v2060_v61  ;;  %2125 = vmatprep.subr.bf16.mxu1 %v2124_v54  ;;  %v928_v61 = vld [vmem:[#allocation11 + $0x1e8] sm:$0xff]  ;;  %v931_v54 = vld [vmem:[#allocation11 + $0x200] sm:$0xff]  ;;  %v2082_v59 = vpack.c.bf16 %v924_v25, %v921_v37 }
 0x4d3   :  { %v2084_v6 = vpack.c.bf16 %v931_v54, %v928_v61  ;;  %v1373_v37 = vld [vmem:[#allocation14 + $0x160] sm:$0xff] }
 0x4d4   :  { %v1333_v25 = vld [vmem:[#allocation14 + $0x20] sm:$0xff] }
 0x4d5   :  { %2063 = vmatpush1.bf16.msra.mxu0 %v2062_v42  ;;  %2127 = vmatpush3.bf16.msra.mxu1 %v2126_v43  ;;  %v1346_v42 = vld [vmem:[#allocation14 + $0x88] sm:$0xff]  ;;  %v934_v43 = vld [vmem:[#allocation11 + $0x218] sm:$0xff]  ;;  %v1329_v54 = vld [vmem:[#allocation14] sm:$0xff] }
 0x4d6   :  { %2065 = vmatprep.subr.bf16.mxu0 %v2064_v48  ;;  %2129 = vmatprep.subr.bf16.mxu1 %v2128_v31  ;;  %v933_v48 = vld [vmem:[#allocation11 + $0x210] sm:$0xff]  ;;  %v2179_v31 = vpack.c.bf16 %v1346_v42, %v1343_v41  ;;  %v2088_v11 = vpack.c.bf16 %v937_v55, %v934_v43  ;;  %v1338_v42 = vld [vmem:[#allocation14 + $0x48] sm:$0xff]  ;;  %v1345_v55 = vld [vmem:[#allocation14 + $0x80] sm:$0xff] }
 0x4d7   :  { %v1335_v41 = vld [vmem:[#allocation14 + $0x30] sm:$0xff]  ;;  %v1342_v43 = vld [vmem:[#allocation14 + $0x68] sm:$0xff] }
 0x4d9   :  { %2067 = vmatpush1.bf16.msra.mxu0 %v2066_v62  ;;  %2131 = vmatpush3.bf16.msra.mxu1 %v2130_v2  ;;  %v2090_v62 = vpack.c.bf16 %v936_v49, %v933_v48  ;;  %v939_v2 = vld [vmem:[#allocation11 + $0x240] sm:$0xff]  ;;  %v2146_v48 = vpack.c.bf16 %v1338_v42, %v1335_v41  ;;  %v1348_v49 = vld [vmem:[#allocation14 + $0x98] sm:$0xff] }
 0x4da   :  { %2069 = vmatprep.subr.bf16.mxu0 %v2068_v5  ;;  %2133 = vmatprep.subr.bf16.mxu1 %v2132_v57  ;;  %v942_v5 = vld [vmem:[#allocation11 + $0x258] sm:$0xff]  ;;  %v1355_v57 = vld [vmem:[#allocation14 + $0xd0] sm:$0xff]  ;;  %v2152_v51 = vpack.c.bf16 %v1351_v56, %v1348_v49 }
 0x4db   :  { %v2094_v10 = vpack.c.bf16 %v942_v5, %v939_v2  ;;  %v2185_v13 = vpack.c.bf16 %v1358_v32, %v1355_v57  ;;  %v1357_v2 = vld [vmem:[#allocation14 + $0xe0] sm:$0xff]  ;;  %v1360_v57 = vld [vmem:[#allocation14 + $0xf8] sm:$0xff]  ;;  %v1363_v32 = vld [vmem:[#allocation14 + $0x110] sm:$0xff] }
 0x4dc   :  { %v1353_v5 = vld [vmem:[#allocation14 + $0xc0] sm:$0xff] }
 0x4dd   :  { %2071 = vmatpush1.bf16.msra.mxu0 %v2070_v14  ;;  %2135 = vmatpush3.bf16.msra.mxu1 %v2134_v16  ;;  %v2096_v14 = vpack.c.bf16 %v949_v9, %v946_v7  ;;  %v948_v16 = vld [vmem:[#allocation11 + $0x288] sm:$0xff]  ;;  %v2160_v9 = vpack.c.bf16 %v1363_v32, %v1360_v57 }
 0x4de   :  { %2073 = vmatprep.subr.bf16.mxu0 %v2072_v18  ;;  %2137 = vmatprep.subr.bf16.mxu1 %v2136_v33  ;;  %v1364_v18 = vld [vmem:[#allocation14 + $0x118] sm:$0xff]  ;;  %v952_v33 = vld [vmem:[#allocation11 + $0x2a8] sm:$0xff]  ;;  %v2098_v58 = vpack.c.bf16 %v948_v16, %v945_v12 }
 0x4df   :  { %v2188_v23 = vpack.c.bf16 %v1364_v18, %v1361_v17  ;;  %v2100_v24 = vpack.c.bf16 %v955_v22, %v952_v33  ;;  %v1362_v12 = vld [vmem:[#allocation14 + $0x108] sm:$0xff]  ;;  %v1365_v18 = vld [vmem:[#allocation14 + $0x120] sm:$0xff]  ;;  %v1368_v33 = vld [vmem:[#allocation14 + $0x138] sm:$0xff] }
 0x4e0   :  { %v1372_v22 = vld [vmem:[#allocation14 + $0x158] sm:$0xff] }
 0x4e1   :  { %2075 = vmatpush1.bf16.msra.mxu0 %v2074_v26  ;;  %2139 = vmatpush3.bf16.msra.mxu1 %v2138_v28  ;;  %v954_v26 = vld [vmem:[#allocation11 + $0x2b8] sm:$0xff]  ;;  %v1367_v28 = vld [vmem:[#allocation14 + $0x130] sm:$0xff] }
 0x4e2   :  { %2077 = vmatprep.subr.bf16.mxu0 %v2076_v29  ;;  %2172 = vmatprep.subr.bf16.mxu1 %v2516_v0  ;;  %v958_v29 = vld [vmem:[#allocation11 + $0x2d8] sm:$0xff]  ;;  %v2102_v21 = vpack.c.bf16 %v954_v26, %v951_v20  ;;  %v2191_v27 = vpack.c.bf16 %v1370_v19, %v1367_v28  ;;  %v2166_v20 = vpack.c.bf16 %v1368_v33, %v1365_v18  ;;  %v1374_v26 = vld [vmem:[#allocation14 + $0x168] sm:$0xff] }
 0x4e3   :  { %v2104_v35 = vpack.c.bf16 %v961_v34, %v958_v29 }
 0x4e4   :  { %1304 = vmatmul.mubr.f32.vlgmr.msra.gmra.mrb[4].mxu1 %v2856_v15 }
 0x4e5   :  { %2079 = vmatpush1.bf16.msra.mxu0 %v2078_v36  ;;  %2174 = vmatpush3.bf16.msra.mxu1 %v2173_v63  ;;  %v960_v36 = vld [vmem:[#allocation11 + $0x2e8] sm:$0xff]  ;;  %v1376_v63 = vld [vmem:[#allocation14 + $0x178] sm:$0xff] }
 0x4e6   :  { %2081 = vmatprep.subr.bf16.mxu0 %v2080_v53  ;;  %2175 = vmatprep.subr.bf16.mxu1 %v2516_v0  ;;  %v1330_v53 = vld [vmem:[#allocation14 + $0x8] sm:$0xff]  ;;  %v2106_v38 = vpack.c.bf16 %v960_v36, %v957_v52  ;;  %v2194_v47 = vpack.c.bf16 %v1376_v63, %v1373_v37 }
 0x4e7   :  { %1929 = vmatprep.mubr.msk.f32.mxu1 %vm2517_vm0, %v2518_v1  ;;  %v2140_v61 = vpack.c.bf16 %v1333_v25, %v1330_v53  ;;  %v1377_v37 = vld [vmem:[%s2949_s11] sm:$0x7] }
 0x4e8   :  { %v1309_v63 = vld [vmem:[%s2948_s10] sm:$0x7]  ;;  %v1382_v25 = vrot.slane %v1377_v37, %v2750_v8  ;;  %s2521_s10 = smov [#allocation17]  }
 0x4e9   :  { %2083 = vmatpush1.bf16.msra.mxu0 %v2082_v59  ;;  %2177 = vmatpush3.bf16.msra.mxu1 %v2176_v39  ;;  %v1332_v59 = vld [vmem:[#allocation14 + $0x18] sm:$0xff]  ;;  %v1339_v39 = vld [vmem:[#allocation14 + $0x50] sm:$0xff]  ;;  %v1314_v53 = vrot.slane %v1309_v63, %v2750_v8  ;;  %s1634_s11 = sshll.u32 %s2521_s10, 4  ;;  %s1635_s11 = int_to_ptr.vmem [resolvable:$true] %s1634_s11 }
 0x4ea   :  { %2085 = vmatprep.subr.bf16.mxu0 %v2084_v6  ;;  %2178 = vmatprep.subr.bf16.mxu1 %v2516_v0  ;;  %v2142_v6 = vpack.c.bf16 %v1332_v59, %v1329_v54  ;;  %v2144_v40 = vpack.c.bf16 %v1339_v39, %v1336_v30  ;;  %s2446_s27 = scalar_lea.vmem %s1635_s11, 128  ;;  %p2451_p9 = scmp.lt.s32.totalorder %s1635_s11, %s1635_s11 }
 0x4eb   :  { %p2447_p8 = scmp.ne.s32.totalorder %s1635_s11, %s2446_s27  ;;  %p2452_p10 = scmp.lt.s32.totalorder %s2446_s27, %s2446_s27 }
 0x4ed   :  { %2087 = vmatpush1.bf16.msra.mxu0 %v2086_v44  ;;  %2180 = vmatpush3.bf16.msra.mxu1 %v2179_v31  ;;  %v2896_v44 = vld [vmem:[#allocation5] sm:$0xff]  ;;  %v1341_v31 = vld [vmem:[#allocation14 + $0x60] sm:$0xff]  ;;  %p2453_p11 = por %p2452_p10, %p2451_p9 }
 0x4ee   :  { %2089 = vmatprep.subr.bf16.mxu0 %v2088_v11  ;;  %2181 = vmatprep.subr.bf16.mxu1 %v2516_v0  ;;  %v1344_v11 = vld [vmem:[#allocation14 + $0x78] sm:$0xff] }
 0x4ef   :  { %v2150_v50 = vpack.c.bf16 %v1344_v11, %v1341_v31  ;;  %p2454_p12 = pnand %p2453_p11, %p2447_p8 }
 0x4f1   :  { %2091 = vmatpush1.bf16.msra.mxu0 %v2090_v62  ;;  %2183 = vmatpush3.bf16.msra.mxu1 %v2182_v3  ;;  %v1354_v62 = vld [vmem:[#allocation14 + $0xc8] sm:$0xff] }
 0x4f2   :  { %2093 = vmatprep.subr.bf16.mxu0 %v2092_v4  ;;  %2184 = vmatprep.subr.bf16.mxu1 %v2516_v0  ;;  %v2156_v4 = vpack.c.bf16 %v1357_v2, %v1354_v62 }
 0x4f5   :  { %2095 = vmatpush1.bf16.msra.mxu0 %v2094_v10  ;;  %2186 = vmatpush3.bf16.msra.mxu1 %v2185_v13  ;;  %v1359_v10 = vld [vmem:[#allocation14 + $0xf0] sm:$0xff]  ;;  %v1366_v13 = vld [vmem:[#allocation14 + $0x128] sm:$0xff] }
 0x4f6   :  { %2097 = vmatprep.subr.bf16.mxu0 %v2096_v14  ;;  %2187 = vmatprep.subr.bf16.mxu1 %v2516_v0  ;;  %v1369_v14 = vld [vmem:[#allocation14 + $0x140] sm:$0xff]  ;;  %v2162_v16 = vpack.c.bf16 %v1362_v12, %v1359_v10 }
 0x4f7   :  { %v2164_v17 = vpack.c.bf16 %v1369_v14, %v1366_v13 }
 0x4f9   :  { %2099 = vmatpush1.bf16.msra.mxu0 %v2098_v58  ;;  %2189 = vmatpush3.bf16.msra.mxu1 %v2188_v23  ;;  %v1375_v58 = vld [vmem:[#allocation14 + $0x170] sm:$0xff] }
 0x4fa   :  { %2101 = vmatprep.subr.bf16.mxu0 %v2100_v24  ;;  %2190 = vmatprep.subr.bf16.mxu1 %v2516_v0  ;;  %v2168_v23 = vpack.c.bf16 %v1375_v58, %v1372_v22  ;;  %v1371_v24 = vld [vmem:[#allocation14 + $0x150] sm:$0xff] }
 0x4fb   :  { %v2170_v28 = vpack.c.bf16 %v1374_v26, %v1371_v24 }
 0x4fd   :  { %2103 = vmatpush1.bf16.msra.mxu0 %v2102_v21  ;;  %2192 = vmatpush3.bf16.msra.mxu1 %v2191_v27 }
 0x4fe   :  { %2105 = vmatprep.subr.bf16.mxu0 %v2104_v35  ;;  %2193 = vmatprep.subr.bf16.mxu1 %v2516_v0  ;;  %v2148_v0 = vpack.c.bf16 %v1345_v55, %v1342_v43  ;;  %v1390_v55 = vrot.slane %v1377_v37, %v2790_v46 }
 0x501   :  { %2107 = vmatpush1.bf16.msra.mxu0 %v2106_v38  ;;  %2195 = vmatpush3.bf16.msra.mxu1 %v2194_v47  ;;  %v1318_v38 = vrot.slane %v1309_v63, %v2787_v45  ;;  %v1386_v47 = vrot.slane %v1377_v37, %v2787_v45 }
 0x502   :  { %2141 = vmatprep.subr.bf16.mxu0 %v2140_v61  ;;  %v2196_v61 = vadd.f32 %v1382_v25, %v1314_v53 }
 0x503   :  { %v2198_v59 = vadd.f32 %v1386_v47, %v1318_v38 }
 0x504   :  { %1233 = vmatmul.mubr.f32.vlgmr.msra.gmra.mrb[8].mxu0 %v2856_v15  ;;  %1930 = vmatmul.mubr.f32.vlgmr.msra.gmra.mrb[6].mxu1 %v2896_v44  ;;  %v1350_v15 = vld [vmem:[#allocation14 + $0xa8] sm:$0xff] }
 0x505   :  { %2143 = vmatpush1.bf16.msra.mxu0 %v2142_v6  ;;  %1458 = vmatprep.mubr.f32.mxu0 %v2518_v1  ;;  %v2154_v3 = vpack.c.bf16 %v1350_v15, %v1347_v60  ;;  %v1356_v1 = vld [vmem:[#allocation14 + $0xd8] sm:$0xff] }
 0x506   :  { %2145 = vmatprep.subr.bf16.mxu0 %v2144_v40  ;;  %v2158_v7 = vpack.c.bf16 %v1356_v1, %v1353_v5 }
 0x509   :  { %2147 = vmatpush1.bf16.msra.mxu0 %v2146_v48  ;;  %v1322_v48 = vrot.slane %v1309_v63, %v2790_v46 }
 0x50a   :  { %2149 = vmatprep.subr.bf16.mxu0 %v2148_v0 }
 0x50d   :  { %2151 = vmatpush1.bf16.msra.mxu0 %v2150_v50 }
 0x50e   :  { %2153 = vmatprep.subr.bf16.mxu0 %v2152_v51 }
 0x511   :  { %2155 = vmatpush1.bf16.msra.mxu0 %v2154_v3 }
 0x512   :  { %2157 = vmatprep.subr.bf16.mxu0 %v2156_v4 }
 0x515   :  { %2159 = vmatpush1.bf16.msra.mxu0 %v2158_v7 }
 0x516   :  { %2161 = vmatprep.subr.bf16.mxu0 %v2160_v9 }
 0x519   :  { %2163 = vmatpush1.bf16.msra.mxu0 %v2162_v16 }
 0x51a   :  { %2165 = vmatprep.subr.bf16.mxu0 %v2164_v17 }
 0x51d   :  { %2167 = vmatpush1.bf16.msra.mxu0 %v2166_v20 }
 0x51e   :  { %2169 = vmatprep.subr.bf16.mxu0 %v2168_v23 }
 0x521   :  { %2171 = vmatpush1.bf16.msra.mxu0 %v2170_v28 }
 0x524   :  { %1459 = vmatmul.mubr.f32.vlgmr.msra.gmra.mrb[8].mxu0 %v2896_v44 }
 0x597   :  { %v1164_v19 = vpop.f32.mrb[2].mxu1 }
 0x598   :  { %v1896_v29 = vpop.f32.mrb[3].mxu1 }
 0x5b7   :  { %v1763_v34 = vpop.f32.mrb[4].mxu1 }
 0x5b8   :  { %v1764_v21 = vpop.f32.mrb[5].mxu1 }
 0x5b9   :  { %v1765_v52 = vadd.f32 %v1764_v21, %v1763_v34 }
 0x5bb   :  { %v1306_v27 = vadd.f32 %v1765_v52, %v1164_v19 }
 0x5bd   :  { %v1328_v11 = vadd.f32 %v1322_v48, %v1306_v27 }
 0x5d7   :  { %v1531_v35 = vpop.f32.mrb[6].mxu1 }
 0x5d8   :  { %v1931_v36 = vpop.f32.mrb[7].mxu1  ;;  %v1532_v45 = vadd.f32 %v1531_v35, %v1390_v55 }
 0x5f7   :  { %v1460_v54 = vpop.f32.mrb[8].mxu0 }
 0x5f8   :  { %v2197_v30 = vadd.f32 %v2196_v61, %v1460_v54  ;;  %v1462_v39 = vpop.f32.mrb[9].mxu0 }
 0x5f9   :  { %v2199_v40 = vadd.f32 %v2198_v59, %v1462_v39 }
 0x5fa   :  { %v1653_v6 = vmul.f32 -1.442695, %v2197_v30 }
 0x5fb   :  { %v1654_v41 = vmul.f32 -1.442695, %v2199_v40 }
 0x5fc   :  { %2259 = vpow2.f32 %v1653_v6 }
 0x5fd   :  { %2261 = vpow2.f32 %v1654_v41 }
 0x606   :  { %v2260_v42 = vpop.eup %2259 }
 0x607   :  { %v1539_v43 = vadd.f32 1.0, %v2260_v42  ;;  %v2262_v8 = vpop.eup %2261 }
 0x608   :  { %v1546_v0 = vadd.f32 1.0, %v2262_v8 }
 0x609   :  { %2263 = vrcp.f32 %v1539_v43 }
 0x60a   :  { %2265 = vrcp.f32 %v1546_v0 }
 0x613   :  { %v2264_v31 = vpop.eup %2263 }
 0x614   :  { %v1549_v49 = vmul.f32 %v2264_v31, %v1532_v45  ;;  %v2266_v50 = vpop.eup %2265 }
 0x615   :  { %v1552_v51 = vsub.f32 1.0, %v2266_v50  ;;  %v1554_v62 = vmul.f32 %v2896_v44, %v2266_v50 }
 0x616   :  { %v1550_v56 = vadd.f32 %v1549_v49, %v1328_v11 }
 0x618   :  { %2267 = vtanh.f32 %v1550_v56 }
 0x622   :  { %v2268_v60 = vpop.eup %2267 }
 0x623   :  { %v1553_v15 = vmul.f32 %v2268_v60, %v1552_v51 }
 0x625   :  { %v1555_v2 = vadd.f32 %v1554_v62, %v1553_v15 }
 0x627   :  { %v1616_v46 = vpack.c.bf16 %v1555_v2, %v1555_v2  ;;  %1556 = vst [vmem:[#allocation17] sm:$0xff] %v1555_v2 }
 0x628   :  { %2457 = shalt.err (!%p2454_p12)
}
 0x629   :  { %s2458_s4 = scalar_lea.hbm %s2951_s13, 128 }
 0x62a   :  { %p2459_p13 = scmp.ne.s32.totalorder %s2951_s13, %s2458_s4  ;;  %p2462_p0 = scmp.lt.u32.totalorder %s2458_s4, %s2951_s13 }
 0x62c   :  { %p2464_p1 = pnand %p2462_p0, %p2459_p13 }
 0x62e   :  { %2467 = shalt.err (!%p2464_p1)
}
 0x62f   :  { %1637 = dma.vmem_to_hbm [thread:$0]  %s1635_s11, 128, %s2951_s13, [#allocation18]   ;;  %1617 = vst [vmem:[#allocation16 + $0xc] sm:$0xf] %v1616_v46 }
 0x630   :  { %s2468_s16 = scalar_lea.vmem %s1625_s24, 256  ;;  %p2473_p3 = scmp.lt.s32.totalorder %s1625_s24, %s1625_s24 }
 0x631   :  { %p2469_p2 = scmp.ne.s32.totalorder %s1625_s24, %s2468_s16  ;;  %p2474_p4 = scmp.lt.s32.totalorder %s2468_s16, %s2468_s16 }
 0x633   :  { %p2475_p5 = por %p2474_p4, %p2473_p3 }
 0x635   :  { %p2476_p6 = pnand %p2475_p5, %p2469_p2 }
 0x637   :  { %2479 = shalt.err (!%p2476_p6)
}
 0x638   :  { %s2480_s17 = scalar_lea.hbm %s2950_s12, 256 }
 0x639   :  { %p2481_p7 = scmp.ne.s32.totalorder %s2950_s12, %s2480_s17  ;;  %p2484_p8 = scmp.lt.u32.totalorder %s2480_s17, %s2950_s12 }
 0x63b   :  { %p2486_p9 = pnand %p2484_p8, %p2481_p7 }
 0x63d   :  { %2489 = shalt.err (!%p2486_p9)
}
 0x63e   :  { %1627 = dma.vmem_to_hbm [thread:$0]  %s1625_s24, 256, %s2950_s12, [#allocation4]  }
 0x63f   :  { %2500 = dma.done.wait [#allocation4], 256  }
 0x640   :  { %2501 = vsyncadd [#allocation4], 4294967040 }
 0x641   :  { %2502 = dma.done.wait [#allocation18], 128  }
 0x642   :  { %2503 = vsyncadd [#allocation18], 4294967168 }
 0x643   :  { %1644 = vsyncpa [#allocation3], 1 }
 0x644   :  { %1645 = vsyncpa [#allocation6], 1 }
 0x645   :  { %1646 = vsyncpa [#allocation9], 1 }
 0x646   :  { %1647 = vsyncpa [#allocation12], 1 }
 0x647   :  { %1648 = vsyncpa [#allocation15], 1 }
 0x648   :  { %1649 = vsyncpa [#allocation4], 1 }
 0x649   :  { %1650 = vsyncpa [#allocation18], 1 }

</bundles_post_ra>
